<compile_context>
chip_gen: v7x
topology: tpu7x:2x2x1
jax: 0.10.0
libtpu: 0.0.40
codegen_flags: <defaults>
</compile_context>

<pallas_src>
import functools
import math

import jax
import jax.numpy as jnp
from jax import lax
from jax.experimental import pallas as pl
from jax.experimental.pallas import tpu as pltpu


# ----------------------------- fused kernel: QKV proj + attention + merge -------------
def fused_self_attention_kernel(x_ref, w_ref, b_ref, o_ref, *,
                                num_heads, head_dim, out_pad):
    """One grid step handles `block_b` batch elements.

    x_ref : (block_b, S, D_in)   input block (f32)
    w_ref : (D_in, 3*hidden)     fused [Wq | Wk | Wv] in bf16 (resident across steps)
    b_ref : (1, 3*hidden)        fused [bq | bk | bv] in f32
    o_ref : (block_b, S, out_pad) merged context, zero-padded to a 128-lane multiple
    """
    block_b, seq, d_in = x_ref.shape
    hidden = num_heads * head_dim
    rows = block_b * seq
    scale = 1.0 / math.sqrt(head_dim)

    # Pack block_b*S rows into one fused MXU matmul (bf16 operands, f32 accumulate).
    x = x_ref[...].reshape(rows, d_in).astype(jnp.bfloat16)
    qkv = (jnp.dot(x, w_ref[...], preferred_element_type=jnp.float32)
           + b_ref[...])                                            # (rows, 3*hidden) f32

    # Fold 1/sqrt(dh) into Q (exact for power-of-two head_dim).
    q = qkv[:, :hidden] * scale
    k = qkv[:, hidden:2 * hidden]
    v = qkv[:, 2 * hidden:3 * hidden]

    ctxs = []
    for h in range(num_heads):                                      # static unroll, H is small
        lo, hi = h * head_dim, (h + 1) * head_dim
        # Leading-dim reshape only (S % 8 friendly): (rows, dh) -> (block_b, S, dh).
        qh = q[:, lo:hi].reshape(block_b, seq, head_dim).astype(jnp.bfloat16)
        kh = k[:, lo:hi].reshape(block_b, seq, head_dim).astype(jnp.bfloat16)
        vh = v[:, lo:hi].reshape(block_b, seq, head_dim).astype(jnp.bfloat16)

        # One batched MXU call per head over the packed batch dim; contracts last dims
        # directly so K needs no XLU transpose.
        s = jnp.einsum("bqd,bkd->bqk", qh, kh,
                       preferred_element_type=jnp.float32)          # (block_b, S, S) f32

        m = jnp.max(s, axis=-1, keepdims=True)
        p = jnp.exp(s - m)
        # TODO(synk): attn_dropout is identity here (eval mode).
        # approx reciprocal = EUP slot; error is dominated by the bf16 matmuls anyway.
        p = p * pl.reciprocal(jnp.sum(p, axis=-1, keepdims=True), approx=True)

        ctxs.append(jnp.einsum("bqk,bkd->bqd", p.astype(jnp.bfloat16), vh,
                               preferred_element_type=jnp.float32))  # (block_b, S, dh)

    ctx = jnp.concatenate(ctxs, axis=-1)                             # (block_b, S, hidden)
    pad = out_pad - hidden
    if pad > 0:
        ctx = jnp.concatenate(
            [ctx, jnp.zeros((block_b, seq, pad), ctx.dtype)], axis=-1)
    # Single lane-dense (128-multiple) store; no masked vst.msk partial stores.
    o_ref[...] = ctx.astype(o_ref.dtype)


def _pick_block_b(batch, seq, target_rows=256):
    """Largest divisor of `batch` with block_b*seq <= target_rows, keeping >= 2 grid
    steps when batch >= 2 so both TensorCores get work on v7x."""
    best = 1
    for bb in range(1, batch + 1):
        if batch % bb != 0:
            continue
        if bb > 1 and bb * seq > target_rows:
            break
        if batch >= 2 and (batch // bb) < 2:
            continue
        best = bb
    return best


def self_attention_forward(x, w_qkv, b_qkv, num_heads, head_dim, block_b=None):
    """x: (B, S, D_in), w_qkv: (D_in, 3*hidden), b_qkv: (1, 3*hidden) -> (B, S, hidden)."""
    B, S, D_in = x.shape
    hidden = num_heads * head_dim
    assert w_qkv.shape == (D_in, 3 * hidden)
    assert b_qkv.shape == (1, 3 * hidden)

    out_pad = ((hidden + 127) // 128) * 128          # lane-dense output width
    if block_b is None:
        block_b = _pick_block_b(B, S)
    assert B % block_b == 0
    grid = (B // block_b,)

    # MXU operands in bf16; done once per call on a tiny weight, halves its DMA bytes.
    w_bf16 = w_qkv.astype(jnp.bfloat16)

    kernel = functools.partial(fused_self_attention_kernel,
                               num_heads=num_heads, head_dim=head_dim,
                               out_pad=out_pad)
    out = pl.pallas_call(
        kernel,
        out_shape=jax.ShapeDtypeStruct((B, S, out_pad), jnp.float32),
        grid=grid,
        in_specs=[
            pl.BlockSpec((block_b, S, D_in), lambda b: (b, 0, 0)),   # packed batch block
            pl.BlockSpec((D_in, 3 * hidden), lambda b: (0, 0)),      # weights stay resident
            pl.BlockSpec((1, 3 * hidden), lambda b: (0, 0)),         # biases stay resident
        ],
        out_specs=pl.BlockSpec((block_b, S, out_pad), lambda b: (b, 0, 0)),
        compiler_params=pltpu.CompilerParams(
            dimension_semantics=("parallel",)),                      # both TCs on v7x
    )(x, w_bf16, b_qkv)
    return out[..., :hidden]                                         # drop lane padding


# ----------------------------- reference (plain JAX) for sanity -----------------------
def reference_forward(x, wq, bq, wk, bk, wv, bv, num_heads, head_dim):
    B, S, _ = x.shape
    q = x @ wq + bq
    k = x @ wk + bk
    v = x @ wv + bv

    def split(t):
        return t.reshape(B, S, num_heads, head_dim).transpose(0, 2, 1, 3)

    q, k, v = split(q), split(k), split(v)
    s = jnp.einsum("bhqd,bhkd->bhqk", q, k) / math.sqrt(head_dim)
    p = jax.nn.softmax(s, axis=-1)
    ctx = jnp.einsum("bhqk,bhkd->bhqd", p, v)
    return ctx.transpose(0, 2, 1, 3).reshape(B, S, num_heads * head_dim)


if __name__ == "__main__":
    # Small shapes consistent with the module: hidden_size % num_of_header == 0.
    B, S = 8, 16
    D_IN = 32
    NUM_HEADS = 3
    HEAD_DIM = 16
    HIDDEN = NUM_HEADS * HEAD_DIM        # 48

    key = jax.random.PRNGKey(0)
    kx, kq, kk, kv, kbq, kbk, kbv = jax.random.split(key, 7)

    x = jax.random.normal(kx, (B, S, D_IN), dtype=jnp.float32)

    # nn.Linear-style params stored as (D_in, hidden) so y = x @ W + b.
    scale = 1.0 / math.sqrt(D_IN)
    wq = jax.random.uniform(kq, (D_IN, HIDDEN), jnp.float32, -scale, scale)
    wk = jax.random.uniform(kk, (D_IN, HIDDEN), jnp.float32, -scale, scale)
    wv = jax.random.uniform(kv, (D_IN, HIDDEN), jnp.float32, -scale, scale)
    bq = jax.random.uniform(kbq, (1, HIDDEN), jnp.float32, -scale, scale)
    bk = jax.random.uniform(kbk, (1, HIDDEN), jnp.float32, -scale, scale)
    bv = jax.random.uniform(kbv, (1, HIDDEN), jnp.float32, -scale, scale)

    # One-time fusion of the three projections into a single wide matmul operand.
    w_qkv = jnp.concatenate([wq, wk, wv], axis=1)        # (D_IN, 3*HIDDEN)
    b_qkv = jnp.concatenate([bq, bk, bv], axis=1)        # (1, 3*HIDDEN)

    out = self_attention_forward(x, w_qkv, b_qkv, NUM_HEADS, HEAD_DIM)
    out = jax.block_until_ready(out)

    ref = reference_forward(x, wq, bq, wk, bk, wv, bv, NUM_HEADS, HEAD_DIM)
    assert out.shape == (B, S, HIDDEN), out.shape
    # Tolerance reflects bf16 MXU operands + the EUP approximate reciprocal in softmax;
    # accumulation stays f32 so errors remain at the few-1e-3 level.
    assert jnp.allclose(out, ref, atol=2e-2, rtol=2e-2), "mismatch vs reference"

    print("KERNEL_OK")
</pallas_src>

<mosaic_0001>
module attributes {stable_mosaic.version = 11 : i64} {
  func.func @fused_self_attention_kernel(%arg0: i32, %arg1: memref<4x16x32xf32, #tpu.memory_space<vmem>>, %arg2: memref<32x144xbf16, #tpu.memory_space<vmem>>, %arg3: memref<1x144xf32, #tpu.memory_space<vmem>>, %arg4: memref<4x16x128xf32, #tpu.memory_space<vmem>>) attributes {dimension_semantics = [#tpu.dimension_semantics<parallel>], iteration_bounds = array<i64: 2>, scalar_prefetch = 0 : i64, scratch_operands = 0 : i64, tpu.core_type = #tpu.core_type<tc>, window_params = [{transform_indices = @transform_0, window_bounds = array<i64: 4, 16, 32>}, {pipeline_mode = #tpu.pipeline_mode<synchronous>, transform_indices = @transform_1, window_bounds = array<i64: 32, 144>}, {pipeline_mode = #tpu.pipeline_mode<synchronous>, transform_indices = @transform_2, window_bounds = array<i64: 1, 144>}, {transform_indices = @transform_3, window_bounds = array<i64: 4, 16, 128>}]} {
    %c0 = arith.constant 0 : index
    %c0_0 = arith.constant 0 : index
    %c0_1 = arith.constant 0 : index
    %0 = vector.load %arg1[%c0, %c0_0, %c0_1] : memref<4x16x32xf32, #tpu.memory_space<vmem>>, vector<4x16x32xf32>
    %1 = vector.shape_cast %0 : vector<4x16x32xf32> to vector<64x32xf32>
    %2 = arith.truncf %1 : vector<64x32xf32> to vector<64x32xbf16>
    %c0_2 = arith.constant 0 : index
    %c0_3 = arith.constant 0 : index
    %3 = vector.load %arg2[%c0_2, %c0_3] : memref<32x144xbf16, #tpu.memory_space<vmem>>, vector<32x144xbf16>
    %cst = arith.constant dense<0.000000e+00> : vector<64x144xf32>
    %4 = tpu.matmul %2, %3, %cst {dimension_numbers = #tpu.dot_dimension_numbers<[1], [0], [0], [1], [0, 0, 1, 1], [], []>} : vector<64x32xbf16>, vector<32x144xbf16>, vector<64x144xf32> -> vector<64x144xf32>
    %c0_4 = arith.constant 0 : index
    %c0_5 = arith.constant 0 : index
    %5 = vector.load %arg3[%c0_4, %c0_5] : memref<1x144xf32, #tpu.memory_space<vmem>>, vector<1x144xf32>
    %6 = vector.broadcast %5 : vector<1x144xf32> to vector<64x144xf32>
    %7 = arith.addf %4, %6 : vector<64x144xf32>
    %8 = vector.extract_strided_slice %7 {offsets = [0, 0], sizes = [64, 48], strides = [1, 1]} : vector<64x144xf32> to vector<64x48xf32>
    %cst_6 = arith.constant 2.500000e-01 : f32
    %9 = vector.broadcast %cst_6 : f32 to vector<64x48xf32>
    %10 = arith.mulf %8, %9 : vector<64x48xf32>
    %11 = vector.extract_strided_slice %7 {offsets = [0, 48], sizes = [64, 48], strides = [1, 1]} : vector<64x144xf32> to vector<64x48xf32>
    %12 = vector.extract_strided_slice %7 {offsets = [0, 96], sizes = [64, 48], strides = [1, 1]} : vector<64x144xf32> to vector<64x48xf32>
    %13 = vector.extract_strided_slice %10 {offsets = [0, 0], sizes = [64, 16], strides = [1, 1]} : vector<64x48xf32> to vector<64x16xf32>
    %14 = vector.shape_cast %13 : vector<64x16xf32> to vector<4x16x16xf32>
    %15 = arith.truncf %14 : vector<4x16x16xf32> to vector<4x16x16xbf16>
    %16 = vector.extract_strided_slice %11 {offsets = [0, 0], sizes = [64, 16], strides = [1, 1]} : vector<64x48xf32> to vector<64x16xf32>
    %17 = vector.shape_cast %16 : vector<64x16xf32> to vector<4x16x16xf32>
    %18 = arith.truncf %17 : vector<4x16x16xf32> to vector<4x16x16xbf16>
    %19 = vector.extract_strided_slice %12 {offsets = [0, 0], sizes = [64, 16], strides = [1, 1]} : vector<64x48xf32> to vector<64x16xf32>
    %20 = vector.shape_cast %19 : vector<64x16xf32> to vector<4x16x16xf32>
    %21 = arith.truncf %20 : vector<4x16x16xf32> to vector<4x16x16xbf16>
    "tpu.trace_start"() <{level = 10 : i32, message = "bqd,bkd->bqk"}> : () -> ()
    %cst_7 = arith.constant dense<0.000000e+00> : vector<4x16x16xf32>
    %22 = tpu.matmul %15, %18, %cst_7 {dimension_numbers = #tpu.dot_dimension_numbers<[2], [2], [1], [1], [0, 0, 0, 1, 1, 1], [0], [0]>} : vector<4x16x16xbf16>, vector<4x16x16xbf16>, vector<4x16x16xf32> -> vector<4x16x16xf32>
    "tpu.trace_stop"() : () -> ()
    %cst_8 = arith.constant dense<0xFF800000> : vector<4x16xf32>
    %23 = vector.multi_reduction <maximumf>, %22, %cst_8 [2] : vector<4x16x16xf32> to vector<4x16xf32>
    %24 = vector.shape_cast %23 : vector<4x16xf32> to vector<4x16x1xf32>
    %25 = vector.broadcast %24 : vector<4x16x1xf32> to vector<4x16x16xf32>
    %26 = arith.subf %22, %25 : vector<4x16x16xf32>
    %27 = math.exp %26 : vector<4x16x16xf32>
    %cst_9 = arith.constant dense<0.000000e+00> : vector<4x16xf32>
    %28 = vector.multi_reduction <add>, %27, %cst_9 [2] : vector<4x16x16xf32> to vector<4x16xf32>
    %29 = vector.shape_cast %28 : vector<4x16xf32> to vector<4x16x1xf32>
    %30 = tpu.reciprocal %29 {approx = true} : vector<4x16x1xf32> -> vector<4x16x1xf32>
    %31 = vector.broadcast %30 : vector<4x16x1xf32> to vector<4x16x16xf32>
    %32 = arith.mulf %27, %31 : vector<4x16x16xf32>
    %33 = arith.truncf %32 : vector<4x16x16xf32> to vector<4x16x16xbf16>
    "tpu.trace_start"() <{level = 10 : i32, message = "bqk,bkd->bqd"}> : () -> ()
    %cst_10 = arith.constant dense<0.000000e+00> : vector<4x16x16xf32>
    %34 = tpu.matmul %33, %21, %cst_10 {dimension_numbers = #tpu.dot_dimension_numbers<[2], [1], [1], [2], [0, 0, 0, 1, 1, 2], [0], [0]>} : vector<4x16x16xbf16>, vector<4x16x16xbf16>, vector<4x16x16xf32> -> vector<4x16x16xf32>
    "tpu.trace_stop"() : () -> ()
    %35 = vector.extract_strided_slice %10 {offsets = [0, 16], sizes = [64, 16], strides = [1, 1]} : vector<64x48xf32> to vector<64x16xf32>
    %36 = vector.shape_cast %35 : vector<64x16xf32> to vector<4x16x16xf32>
    %37 = arith.truncf %36 : vector<4x16x16xf32> to vector<4x16x16xbf16>
    %38 = vector.extract_strided_slice %11 {offsets = [0, 16], sizes = [64, 16], strides = [1, 1]} : vector<64x48xf32> to vector<64x16xf32>
    %39 = vector.shape_cast %38 : vector<64x16xf32> to vector<4x16x16xf32>
    %40 = arith.truncf %39 : vector<4x16x16xf32> to vector<4x16x16xbf16>
    %41 = vector.extract_strided_slice %12 {offsets = [0, 16], sizes = [64, 16], strides = [1, 1]} : vector<64x48xf32> to vector<64x16xf32>
    %42 = vector.shape_cast %41 : vector<64x16xf32> to vector<4x16x16xf32>
    %43 = arith.truncf %42 : vector<4x16x16xf32> to vector<4x16x16xbf16>
    "tpu.trace_start"() <{level = 10 : i32, message = "bqd,bkd->bqk"}> : () -> ()
    %cst_11 = arith.constant dense<0.000000e+00> : vector<4x16x16xf32>
    %44 = tpu.matmul %37, %40, %cst_11 {dimension_numbers = #tpu.dot_dimension_numbers<[2], [2], [1], [1], [0, 0, 0, 1, 1, 1], [0], [0]>} : vector<4x16x16xbf16>, vector<4x16x16xbf16>, vector<4x16x16xf32> -> vector<4x16x16xf32>
    "tpu.trace_stop"() : () -> ()
    %cst_12 = arith.constant dense<0xFF800000> : vector<4x16xf32>
    %45 = vector.multi_reduction <maximumf>, %44, %cst_12 [2] : vector<4x16x16xf32> to vector<4x16xf32>
    %46 = vector.shape_cast %45 : vector<4x16xf32> to vector<4x16x1xf32>
    %47 = vector.broadcast %46 : vector<4x16x1xf32> to vector<4x16x16xf32>
    %48 = arith.subf %44, %47 : vector<4x16x16xf32>
    %49 = math.exp %48 : vector<4x16x16xf32>
    %cst_13 = arith.constant dense<0.000000e+00> : vector<4x16xf32>
    %50 = vector.multi_reduction <add>, %49, %cst_13 [2] : vector<4x16x16xf32> to vector<4x16xf32>
    %51 = vector.shape_cast %50 : vector<4x16xf32> to vector<4x16x1xf32>
    %52 = tpu.reciprocal %51 {approx = true} : vector<4x16x1xf32> -> vector<4x16x1xf32>
    %53 = vector.broadcast %52 : vector<4x16x1xf32> to vector<4x16x16xf32>
    %54 = arith.mulf %49, %53 : vector<4x16x16xf32>
    %55 = arith.truncf %54 : vector<4x16x16xf32> to vector<4x16x16xbf16>
    "tpu.trace_start"() <{level = 10 : i32, message = "bqk,bkd->bqd"}> : () -> ()
    %cst_14 = arith.constant dense<0.000000e+00> : vector<4x16x16xf32>
    %56 = tpu.matmul %55, %43, %cst_14 {dimension_numbers = #tpu.dot_dimension_numbers<[2], [1], [1], [2], [0, 0, 0, 1, 1, 2], [0], [0]>} : vector<4x16x16xbf16>, vector<4x16x16xbf16>, vector<4x16x16xf32> -> vector<4x16x16xf32>
    "tpu.trace_stop"() : () -> ()
    %57 = vector.extract_strided_slice %10 {offsets = [0, 32], sizes = [64, 16], strides = [1, 1]} : vector<64x48xf32> to vector<64x16xf32>
    %58 = vector.shape_cast %57 : vector<64x16xf32> to vector<4x16x16xf32>
    %59 = arith.truncf %58 : vector<4x16x16xf32> to vector<4x16x16xbf16>
    %60 = vector.extract_strided_slice %11 {offsets = [0, 32], sizes = [64, 16], strides = [1, 1]} : vector<64x48xf32> to vector<64x16xf32>
    %61 = vector.shape_cast %60 : vector<64x16xf32> to vector<4x16x16xf32>
    %62 = arith.truncf %61 : vector<4x16x16xf32> to vector<4x16x16xbf16>
    %63 = vector.extract_strided_slice %12 {offsets = [0, 32], sizes = [64, 16], strides = [1, 1]} : vector<64x48xf32> to vector<64x16xf32>
    %64 = vector.shape_cast %63 : vector<64x16xf32> to vector<4x16x16xf32>
    %65 = arith.truncf %64 : vector<4x16x16xf32> to vector<4x16x16xbf16>
    "tpu.trace_start"() <{level = 10 : i32, message = "bqd,bkd->bqk"}> : () -> ()
    %cst_15 = arith.constant dense<0.000000e+00> : vector<4x16x16xf32>
    %66 = tpu.matmul %59, %62, %cst_15 {dimension_numbers = #tpu.dot_dimension_numbers<[2], [2], [1], [1], [0, 0, 0, 1, 1, 1], [0], [0]>} : vector<4x16x16xbf16>, vector<4x16x16xbf16>, vector<4x16x16xf32> -> vector<4x16x16xf32>
    "tpu.trace_stop"() : () -> ()
    %cst_16 = arith.constant dense<0xFF800000> : vector<4x16xf32>
    %67 = vector.multi_reduction <maximumf>, %66, %cst_16 [2] : vector<4x16x16xf32> to vector<4x16xf32>
    %68 = vector.shape_cast %67 : vector<4x16xf32> to vector<4x16x1xf32>
    %69 = vector.broadcast %68 : vector<4x16x1xf32> to vector<4x16x16xf32>
    %70 = arith.subf %66, %69 : vector<4x16x16xf32>
    %71 = math.exp %70 : vector<4x16x16xf32>
    %cst_17 = arith.constant dense<0.000000e+00> : vector<4x16xf32>
    %72 = vector.multi_reduction <add>, %71, %cst_17 [2] : vector<4x16x16xf32> to vector<4x16xf32>
    %73 = vector.shape_cast %72 : vector<4x16xf32> to vector<4x16x1xf32>
    %74 = tpu.reciprocal %73 {approx = true} : vector<4x16x1xf32> -> vector<4x16x1xf32>
    %75 = vector.broadcast %74 : vector<4x16x1xf32> to vector<4x16x16xf32>
    %76 = arith.mulf %71, %75 : vector<4x16x16xf32>
    %77 = arith.truncf %76 : vector<4x16x16xf32> to vector<4x16x16xbf16>
    "tpu.trace_start"() <{level = 10 : i32, message = "bqk,bkd->bqd"}> : () -> ()
    %cst_18 = arith.constant dense<0.000000e+00> : vector<4x16x16xf32>
    %78 = tpu.matmul %77, %65, %cst_18 {dimension_numbers = #tpu.dot_dimension_numbers<[2], [1], [1], [2], [0, 0, 0, 1, 1, 2], [0], [0]>} : vector<4x16x16xbf16>, vector<4x16x16xbf16>, vector<4x16x16xf32> -> vector<4x16x16xf32>
    "tpu.trace_stop"() : () -> ()
    %79 = tpu.concatenate %34, %56, %78 in 2 : vector<4x16x16xf32>, vector<4x16x16xf32>, vector<4x16x16xf32> -> vector<4x16x48xf32>
    %cst_19 = arith.constant 0.000000e+00 : f32
    %80 = vector.broadcast %cst_19 : f32 to vector<4x16x80xf32>
    %81 = tpu.concatenate %79, %80 in 2 : vector<4x16x48xf32>, vector<4x16x80xf32> -> vector<4x16x128xf32>
    %c0_20 = arith.constant 0 : index
    %c0_21 = arith.constant 0 : index
    %c0_22 = arith.constant 0 : index
    %82 = vector.load %arg4[%c0_20, %c0_21, %c0_22] : memref<4x16x128xf32, #tpu.memory_space<vmem>>, vector<4x16x128xf32>
    tpu.vector_store %arg4[%c0_20, %c0_21, %c0_22], %81 {strides = array<i32>} : memref<4x16x128xf32, #tpu.memory_space<vmem>>, vector<4x16x128xf32>,
    return
  }
  func.func @transform_0(%arg0: i32) -> (i32, i32, i32) {
    %c0_i32 = arith.constant 0 : i32
    %c0_i32_0 = arith.constant 0 : i32
    %c0_i32_1 = arith.constant 0 : i32
    return %arg0, %c0_i32, %c0_i32_0 : i32, i32, i32
  }
  func.func @transform_1(%arg0: i32) -> (i32, i32) {
    %c0_i32 = arith.constant 0 : i32
    %c0_i32_0 = arith.constant 0 : i32
    %c0_i32_1 = arith.constant 0 : i32
    return %c0_i32, %c0_i32_0 : i32, i32
  }
  func.func @transform_2(%arg0: i32) -> (i32, i32) {
    %c0_i32 = arith.constant 0 : i32
    %c0_i32_0 = arith.constant 0 : i32
    %c0_i32_1 = arith.constant 0 : i32
    return %c0_i32, %c0_i32_0 : i32, i32
  }
  func.func @transform_3(%arg0: i32) -> (i32, i32, i32) {
    %c0_i32 = arith.constant 0 : i32
    %c0_i32_0 = arith.constant 0 : i32
    %c0_i32_1 = arith.constant 0 : i32
    return %arg0, %c0_i32, %c0_i32_0 : i32, i32, i32
  }
}

</mosaic_0001>

<bundles_post_ra>
// kernel: tpu_custom_call.1
= control target key start
LH: loop header
LB: loop body
LE: loop exit
PB: predicated region body
PF: predicated region fallthrough
CT: control target
= control target key end

     0   :  { %8 = vsyncpa [#allocation3], 0  ;;  %s3195_s0 = inlined_call_operand.hbm [shape: f32[8,16,32], index: 0, kind: input, shape index: {}]   ;;  %s3196_s1 = inlined_call_operand.hbm [shape: bf16[32,144], index: 1, kind: input, shape index: {}]   ;;  %s3197_s2 = inlined_call_operand.vmem [shape: f32[1,144], index: 2, kind: input, shape index: {}]   ;;  %s3198_s3 = inlined_call_operand.hbm [shape: f32[8,16,128], index: 3, kind: output, shape index: {}]  }
   0x1   :  { %10 = vsyncpa [#allocation3 + $0x1], 0 }
   0x2   :  { %11 = vsyncpa [#allocation6], 0 }
   0x3   :  { %12 = vsyncpa [#allocation4], 0 }
   0x4   :  { %14 = vsyncpa [#allocation4 + $0x1], 0  ;;  %s2584_s12 = smov 0   ;;  %s2586_s13 = smov 0  }
   0x5   :  { %s2588_s14 = smov 0   ;;  %s2590_s15 = smov 0  }
   0x6 LB: > { %s2605_s16 = sadd.s32 4294967295, %s2545_s15   ;;  %s1998_s17 = sadd.s32 4294967294, %s2545_s15   ;;  %s2545_s15 = sphi %s2590_s15, %s3218_s15   ;;  %s2541_s14 = sphi %s2588_s14, %s3217_s14   ;;  %s2537_s13 = sphi %s2586_s13, %s3216_s13   ;;  %s2533_s12 = sphi %s2584_s12, %s3215_s12  }
   0x7   : > { %p40_p0 = scmp.ne.s32.totalorder %s2537_s13, %s2533_s12  ;;  %p3199_p1 = scmp.eq.s32.totalorder %s2605_s16, 0 }
   0x8   : > { %p112_p3 = scmp.eq.s32.totalorder %s1998_s17, 1  ;;  %p1999_p5 = scmp.ge.s32.totalorder %s2545_s15, 1 }
   0x9   : > { %p2614_p4 = por %p3199_p1, %p40_p0  ;;  %p119_p7 = scmp.lt.s32.totalorder %s2545_s15, 3 }
   0xa   : > { %p2619_p6 = por %p112_p3, %p40_p0  ;;  %s2547_s21 = smov [#allocation5]  }
   0xb   : > { %s3202_s18 = scalar_select %p2614_p4, 1, 0 }
   0xc   : > { %s3203_s19 = scalar_select %p2619_p6, 1, 0 }
   0xd   : > { %p2624_p8 = pnand %p1999_p5, %p119_p7  ;;  %s131_s22 = sshll.u32 %s2547_s21, 4  ;;  %s2628_s22 = int_to_ptr.vmem [resolvable:$true] %s131_s22 }
   0xe   : > { %s2640_s24 = sadd.s32 1, %s2545_s15   ;;  %s27_s25 = sadd.s32 1, %s2541_s14 }
   0xf   : > { %s3204_s20 = scalar_select %p2624_p8, 1, 0 }
  0x10   : > { %p2252_p9 = pneg %p2624_p8  ;;  %s24_s26 = ssub.s32 %s2545_s15, %s2640_s24 }
  0x11   : > { %s2417_s29 = scalar_lea.hbm %s3196_s1, 512 }
  0x12   : > { %p2635_p11 = pnand %p2252_p9, %p3199_p1  ;;  %p2418_p12 = scmp.ne.s32.totalorder %s3196_s1, %s2417_s29 }
  0x13   : > { %p2424_p5 = scmp.lt.u32.totalorder %s2417_s29, %s3196_s1 }
  0x14   : > { %p2419_p13 = pneg %p2635_p11 }
  0x16   : > { %p2420_p0 = pnand %p2419_p13, %p2418_p12 }
  0x18   : > { %p2421_p3 = pneg %p2420_p0 }
  0x1a   : > { %p2426_p7 = pnand %p2424_p5, %p2421_p3 }
  0x1c   : > { %2429 = shalt.err (!%p2426_p7)
}
  0x1d   : > { %s2430_s7 = scalar_lea.vmem %s2628_s22, 512  ;;  %p2438_p2 = scmp.lt.s32.totalorder %s2628_s22, %s2628_s22 }
  0x1e   : > { %p2431_p9 = scmp.ne.s32.totalorder %s2628_s22, %s2430_s7  ;;  %p2439_p6 = scmp.lt.s32.totalorder %s2430_s7, %s2430_s7 }
  0x20   : > { %p2433_p10 = pnand %p2431_p9, %p2419_p13  ;;  %p2440_p4 = por %p2439_p6, %p2438_p2 }
  0x22   : > { %p2434_p1 = pneg %p2433_p10 }
  0x24   : > { %p2441_p8 = pnand %p2440_p4, %p2434_p1 }
  0x26   : > { %2444 = shalt.err (!%p2441_p8)
}
  0x27   : > { %s2548_s8 = smov 128   ;;  %s2549_s9 = smov 8  }
  0x28   : > { %2255 = dma.hbm_to_vmem [thread:$0]  (!%p2635_p11), %s3196_s1, 512, %s2628_s22, [#allocation6], %s2548_s8, %s2548_s8, %s2549_s9  }
  0x29   : > { %p25_p1 = scmp.eq.s32.totalorder %s24_s26, 0  ;;  %p34_p2 = scmp.ne.s32.totalorder %s2541_s14, %s2537_s13 }
  0x2a   : > { %p35_p4 = scmp.eq.s32.totalorder %s2545_s15, 0  ;;  %p2265_p6 = scmp.lt.s32.totalorder %s2545_s15, 2 }
  0x2b   : > { %s2674_s17 = scalar_select %p25_p1, %s2541_s14, %s27_s25  }
  0x2c   : > { %p36_p8 = por %p35_p4, %p34_p2  ;;  %p3206_p10 = scmp.eq.s32.totalorder %s2605_s16, 1 }
  0x2d   : > { %s148_s23 = sand.u32 1, %s2541_s14   ;;  %s2049_s27 = sshll.u32 %s2545_s15, 10 }
  0x2e   : > { %p2678_p12 = por %p3206_p10, %p34_p2  ;;  %s2002_s28 = sshll.u32 %s148_s23, 6 }
  0x2f   : > { %s2687_s4 = scalar_lea.hbm %s3195_s0, %s2049_s27  ;;  %s152_s22 = scalar_lea.vmem [#allocation2], %s2002_s28 }
  0x30   : > { %s160_s25 = sshll.u32 %s152_s22, 4  ;;  %p2689_p11 = pnand %p2265_p6, %p36_p8  ;;  %s2693_s25 = int_to_ptr.vmem [resolvable:$true] %s160_s25 }
  0x31   : > { %s2695_s5 = scalar_lea.sflag [#allocation3], %s148_s23  ;;  %s2445_s6 = scalar_lea.hbm %s2687_s4, 1024 }
  0x32   : > { %p2446_p13 = scmp.ne.s32.totalorder %s2687_s4, %s2445_s6  ;;  %p2447_p0 = pneg %p2689_p11 }
  0x33   : > { %s2450_s11 = scalar_lea.hbm %s3195_s0, 2048  ;;  %p2451_p7 = scmp.lt.u32.totalorder %s2687_s4, %s3195_s0 }
  0x34   : > { %p2448_p3 = pnand %p2447_p0, %p2446_p13  ;;  %p2452_p9 = scmp.lt.u32.totalorder %s2450_s11, %s2445_s6 }
  0x35   : > { %p2454_p2 = scmp.lt.u32.totalorder %s2445_s6, %s2687_s4 }
  0x36   : > { %p2449_p5 = pneg %p2448_p3  ;;  %p2453_p1 = por %p2452_p9, %p2451_p7 }
  0x38   : > { %p2455_p4 = por %p2454_p2, %p2453_p1 }
  0x3a   : > { %p2456_p6 = pnand %p2455_p4, %p2449_p5 }
  0x3c   : > { %2459 = shalt.err (!%p2456_p6)
}
  0x3d   : > { %s2460_s23 = scalar_lea.vmem %s2693_s25, 1024  ;;  %s2550_s29 = smov [#allocation2]  }
  0x3e   : > { %p2461_p8 = scmp.ne.s32.totalorder %s2693_s25, %s2460_s23  ;;  %s2465_s30 = sshll.u32 %s2550_s29, 4  ;;  %s2466_s30 = int_to_ptr.vmem [resolvable:$false] %s2465_s30 }
  0x3f   : > { %s2467_s22 = scalar_lea.vmem %s2466_s30, 2048  ;;  %p2468_p3 = scmp.lt.s32.totalorder %s2693_s25, %s2466_s30 }
  0x40   : > { %p2463_p10 = pnand %p2461_p8, %p2447_p0  ;;  %p2469_p7 = scmp.lt.s32.totalorder %s2467_s22, %s2460_s23 }
  0x42   : > { %p2464_p13 = pneg %p2463_p10  ;;  %p2470_p9 = por %p2469_p7, %p2468_p3 }
  0x44   : > { %p2471_p1 = pnand %p2470_p9, %p2464_p13 }
  0x46   : > { %2474 = shalt.err (!%p2471_p1)
}
  0x47   : > { %2259 = dma.hbm_to_vmem [thread:$0]  (!%p2689_p11), %s2687_s4, 1024, %s2693_s25, %s2695_s5, %s2548_s8, %s2548_s8, %s2549_s9  }
  0x48   : > { %p3209_p0 = scmp.ne.s32.totalorder %s3204_s20, 0 }
  0x49   : > { %s2729_s6 = sand.u32 (!%p3209_p0), 1, %s2537_s13   ;;  %p3210_p5 = scmp.ne.s32.totalorder (!%p3209_p0), %s3202_s18, 0 }
  0x4a   : > { %172 = sbr.rel (%p3209_p0) target bundleno = 2432 (0x980), region = 32  ;;  %s2007_s7 = sshll.u32 (!%p3209_p0), %s2729_s6, 6 }
  0x4b   : > { %s175_s10 = scalar_lea.sflag (!%p3209_p0), [#allocation3], %s2729_s6  ;;  %s2735_s26 = scalar_lea.vmem (!%p3209_p0), [#allocation2], %s2007_s7 }
  0x51   : > { %2520 = dma.done.wait (%p3210_p5), %s175_s10, 1024  }
  0x52   : > { %2522 = vsyncadd (%p3210_p5), %s175_s10, 4294966272  ;;  %p3211_p11 = scmp.eq.s32.totalorder %s2605_s16, 0 }
  0x54   : > { %2524 = dma.done.wait (%p3211_p11), [#allocation6], 512   ;;  %p3212_p2 = pmov %p3211_p11 }
  0x55   : > { %v2551_v0 = vmov 0   ;;  %v2315_v1 = vld [vmem:[#allocation5 + $0x4] ss:$8 sps:$4 sm:$0xff]   ;;  %v2317_v2 = vld [vmem:[#allocation5] ss:$8 sps:$4 sm:$0xff]   ;;  %vm256_vm0 = vcmask 261120   ;;  %v226_v17 = vlaneseq }
  0x56   : > { %2526 = vsyncadd (%p3212_p2), [#allocation6], 4294966784  ;;  %301 = vmatprep.mubr.bf16.mxu0 %v2551_v0  ;;  %269 = vmatprep.subr.bf16.mxu0 %v2315_v1  ;;  %v2318_v3 = vld [vmem:[#allocation5 + $0x14] ss:$8 sps:$4 sm:$0xff]   ;;  %v2320_v4 = vld [vmem:[#allocation5 + $0x10] ss:$8 sps:$4 sm:$0xff]  }
  0x57   : > { %270 = vmatpush1.bf16.msra.mxu0 %v2317_v2  ;;  %v208_v5 = vld [vmem:[%s2735_s26] sm:$0xff]  ;;  %v209_v6 = vld [vmem:[%s2735_s26 + $0x8] sm:$0xff]  ;;  %v210_v8 = vld [vmem:[%s2735_s26 + $0x10] sm:$0xff]  ;;  %v227_v18 = vshrl.u32 %v226_v17, 7  ;;  %v2552_v21 = vmov 0.0   ;;  %vm2553_vm1 = vmmov 0  }
  0x58   : > { %271 = vmatprep.subr.bf16.mxu0 %v2318_v3  ;;  %v216_v7 = vpack.c.bf16 %v209_v6, %v208_v5  ;;  %v211_v9 = vld [vmem:[%s2735_s26 + $0x18] sm:$0xff]  ;;  %v212_v11 = vld [vmem:[%s2735_s26 + $0x20] sm:$0xff]  ;;  %v213_v12 = vld [vmem:[%s2735_s26 + $0x28] sm:$0xff]  ;;  %2100 = vmatprep.subr.bf16.mxu1 %v2552_v21  ;;  %s2554_s8 = smov 80   ;;  %vm361_vm2 = vcmask 130048   ;;  %s2555_s9 = smov 32  }
  0x59   : > { %v217_v10 = vpack.c.bf16 %v211_v9, %v210_v8  ;;  %v218_v13 = vpack.c.bf16 %v213_v12, %v212_v11  ;;  %v214_v14 = vld [vmem:[%s2735_s26 + $0x30] sm:$0xff]  ;;  %v215_v15 = vld [vmem:[%s2735_s26 + $0x38] sm:$0xff]  ;;  %v228_v19 = vsub.s32 0, %v227_v18  ;;  %v224_v20 = vld [vmem:[%s3197_s2] sm:$0x3]  ;;  %v232_v22 = vsub.s32 1, %v227_v18  ;;  %2102 = vmatprep.mubr.msk.bf16.mxu1 %vm2553_vm1, %v2552_v21 }
  0x5a   : > { %v219_v16 = vpack.c.bf16 %v215_v15, %v214_v14  ;;  %s2556_s4 = smov 64   ;;  %s2557_s25 = smov 112   ;;  %vm1883_vm3 = vcmask 392192  }
  0x5b   : > { %272 = vmatpush1.bf16.msra.mxu0 %v2320_v4  ;;  %v229_v23 = vrot.slane %v224_v20, %v228_v19  ;;  %v233_v25 = vrot.slane %v224_v20, %v232_v22  ;;  %s2558_s5 = smov 16   ;;  %s2559_s11 = smov 48  }
  0x5c   : > { %2124 = vmatprep.subr.bf16.mxu0 %v2552_v21  ;;  %s2560_s27 = smov 96   ;;  %s3108_s28 = scalar_lea.vmem [#allocation7], %s2007_s7 }
  0x5d   : > { %s1915_s23 = sshll.u32 %s3108_s28, 4  ;;  %s2051_s29 = sshll.u32 %s2605_s16, 10  ;;  %s3137_s23 = int_to_ptr.vmem [resolvable:$true] %s1915_s23 }
  0x5e   : > { %2014 = vmatmul.mubr.msk.bf16.vlgmr.msra.gmra.mrb[0].mxu0 %vm256_vm0, %v216_v7  ;;  %s3147_s22 = scalar_lea.hbm %s3198_s3, %s2051_s29  ;;  %s1901_s7 = scalar_lea.sflag [#allocation4], %s2729_s6 }
  0x5f   : > { %311 = vmatprep.mubr.bf16.mxu0 %v2551_v0  ;;  %s2475_s10 = scalar_lea.vmem %s3137_s23, 1024  ;;  %s2561_s26 = smov [#allocation7]  }
  0x60   : > { %p2476_p4 = scmp.ne.s32.totalorder %s3137_s23, %s2475_s10  ;;  %s2479_s18 = sshll.u32 %s2561_s26, 4  ;;  %s2480_s18 = int_to_ptr.vmem [resolvable:$false] %s2479_s18 }
  0x61   : > { %s2481_s20 = scalar_lea.vmem %s2480_s18, 2048  ;;  %p2482_p10 = scmp.lt.s32.totalorder %s3137_s23, %s2480_s18 }
  0x62   : > { %p2477_p6 = pnand %p2476_p4, %p2678_p12  ;;  %p2483_p13 = scmp.lt.s32.totalorder %s2481_s20, %s2475_s10 }
  0x64   : > { %p2478_p8 = pneg %p2477_p6  ;;  %p2484_p3 = por %p2483_p13, %p2482_p10 }
  0x66   : > { %2015 = vmatmul.mubr.msk.bf16.gmra.mrb[4].mxu0 %vm256_vm0, %v217_v10  ;;  %p2485_p7 = pnand %p2484_p3, %p2478_p8 }
  0x67   : > { %321 = vmatprep.mubr.bf16.mxu0 %v2551_v0 }
  0x6e   : > { %2016 = vmatmul.mubr.msk.bf16.gmra.mrb[8].mxu0 %vm256_vm0, %v218_v13 }
  0x6f   : > { %331 = vmatprep.mubr.bf16.mxu0 %v2551_v0 }
  0x76   : > { %2017 = vmatmul.mubr.msk.bf16.gmra.mrb[12].mxu0 %vm256_vm0, %v219_v16 }
  0x77   : > { %2126 = vmatprep.mubr.msk.bf16.mxu0 %vm2553_vm1, %v2552_v21 }
 0x131   : > { %v303_v24 = vpop.f32.mrb[0].mxu0 }
 0x132   : > { %v304_v26 = vadd.f32 %v303_v24, %v229_v23  ;;  %v305_v27 = vpop.f32.mrb[1].mxu0 }
 0x133   : > { %v307_v28 = vpop.f32.mrb[2].mxu0  ;;  %v2766_v31 = vadd.f32 %v305_v27, %v233_v25 }
 0x134   : > { %v308_v29 = vadd.f32 %v307_v28, %v229_v23  ;;  %v309_v30 = vpop.f32.mrb[3].mxu0  ;;  %v342_v33 = vmul.f32 0.25, %v304_v26 }
 0x135   : > { %v2768_v32 = vadd.f32 %v309_v30, %v233_v25 }
 0x136   : > { %v343_v34 = vmul.f32 0.25, %v308_v29  ;;  %v2770_v35 = vpack.c.bf16 %v308_v29, %v304_v26 }
 0x137   : > { %v1327_v36 = vpack.c.bf16 %v2768_v32, %v2766_v31 }
 0x138   : > { %v2774_v37 = vpack.c.bf16 %v343_v34, %v342_v33  ;;  %359 = vrot.lane.b32.xlu0 %v2770_v35, %s2554_s8 }
 0x139   : > { %v313_v38 = vpop.f32.mrb[4].mxu0 }
 0x13a   : > { %v314_v39 = vadd.f32 %v313_v38, %v229_v23  ;;  %v315_v40 = vpop.f32.mrb[5].mxu0 }
 0x13b   : > { %v317_v41 = vpop.f32.mrb[6].mxu0  ;;  %v2778_v44 = vadd.f32 %v315_v40, %v233_v25 }
 0x13c   : > { %v318_v42 = vadd.f32 %v317_v41, %v229_v23  ;;  %v319_v43 = vpop.f32.mrb[7].mxu0  ;;  %v344_v46 = vmul.f32 0.25, %v314_v39 }
 0x13d   : > { %v2780_v45 = vadd.f32 %v319_v43, %v233_v25 }
 0x13e   : > { %v345_v47 = vmul.f32 0.25, %v318_v42  ;;  %v2782_v48 = vpack.c.bf16 %v318_v42, %v314_v39 }
 0x13f   : > { %v1328_v49 = vpack.c.bf16 %v2780_v45, %v2778_v44 }
 0x140   : > { %v2786_v50 = vpack.c.bf16 %v345_v47, %v344_v46  ;;  %410 = vrot.lane.b32.xlu0 %v2782_v48, %s2554_s8 }
 0x141   : > { %v323_v51 = vpop.f32.mrb[8].mxu0 }
 0x142   : > { %v324_v52 = vadd.f32 %v323_v51, %v229_v23  ;;  %v325_v53 = vpop.f32.mrb[9].mxu0 }
 0x143   : > { %v2790_v54 = vadd.f32 %v325_v53, %v233_v25  ;;  %v327_v55 = vpop.f32.mrb[10].mxu0 }
 0x144   : > { %v328_v56 = vadd.f32 %v327_v55, %v229_v23  ;;  %v329_v57 = vpop.f32.mrb[11].mxu0  ;;  %v346_v59 = vmul.f32 0.25, %v324_v52 }
 0x145   : > { %v2792_v58 = vadd.f32 %v329_v57, %v233_v25 }
 0x146   : > { %v347_v60 = vmul.f32 0.25, %v328_v56  ;;  %v2794_v61 = vpack.c.bf16 %v328_v56, %v324_v52 }
 0x147   : > { %v1329_v62 = vpack.c.bf16 %v2792_v58, %v2790_v54 }
 0x148   : > { %v2798_v63 = vpack.c.bf16 %v347_v60, %v346_v59  ;;  %460 = vrot.lane.b32.xlu1 %v2794_v61, %s2554_s8 }
 0x149   : > { %v333_v0 = vpop.f32.mrb[12].mxu0 }
 0x14a   : > { %v334_v1 = vadd.f32 %v333_v0, %v229_v23  ;;  %v335_v2 = vpop.f32.mrb[13].mxu0 }
 0x14b   : > { %v2802_v3 = vadd.f32 %v335_v2, %v233_v25  ;;  %v337_v4 = vpop.f32.mrb[14].mxu0 }
 0x14c   : > { %v338_v5 = vadd.f32 %v337_v4, %v229_v23  ;;  %v339_v6 = vpop.f32.mrb[15].mxu0  ;;  %v348_v8 = vmul.f32 0.25, %v334_v1 }
 0x14d   : > { %v2804_v7 = vadd.f32 %v339_v6, %v233_v25 }
 0x14e   : > { %v349_v9 = vmul.f32 0.25, %v338_v5  ;;  %v2806_v10 = vpack.c.bf16 %v338_v5, %v334_v1 }
 0x14f   : > { %v1330_v11 = vpack.c.bf16 %v2804_v7, %v2802_v3 }
 0x150   : > { %v2810_v12 = vpack.c.bf16 %v349_v9, %v348_v8  ;;  %510 = vrot.lane.b32.xlu1 %v2806_v10, %s2554_s8 }
 0x1aa   : > { %v360_v13 = vpop.permute.xlu0 %359 }
 0x1ab   : > { %v366_v14 = vsel %vm361_vm2, %v360_v13, 0 }
 0x1ac   : > { %2101 = vmatpush3.bf16.xpose.msra.mxu1 %v366_v14 }
 0x1ad   : > { %2106 = vmatprep.subr.bf16.mxu1 %v2552_v21 }
 0x1b2   : > { %v411_v15 = vpop.permute.xlu0 %410 }
 0x1b3   : > { %v416_v16 = vsel %vm361_vm2, %v411_v15, 0  ;;  %2103 = vmatmul.mubr.msk.bf16.vlgmr.msra.gmra.mrb[0].mxu1 %vm361_vm2, %v2774_v37 }
 0x1b4   : > { %2107 = vmatpush3.bf16.xpose.msra.mxu1 %v416_v16  ;;  %2108 = vmatprep.mubr.msk.bf16.mxu1 %vm2553_vm1, %v2552_v21 }
 0x1b5   : > { %2112 = vmatprep.subr.bf16.mxu1 %v2552_v21 }
 0x1ba   : > { %v461_v17 = vpop.permute.xlu1 %460 }
 0x1bb   : > { %v466_v18 = vsel %vm361_vm2, %v461_v17, 0  ;;  %2109 = vmatmul.mubr.msk.bf16.vlgmr.msra.gmra.mrb[4].mxu1 %vm361_vm2, %v2786_v50 }
 0x1bc   : > { %2113 = vmatpush3.bf16.xpose.msra.mxu1 %v466_v18  ;;  %2114 = vmatprep.mubr.msk.bf16.mxu1 %vm2553_vm1, %v2552_v21 }
 0x1bd   : > { %2118 = vmatprep.subr.bf16.mxu1 %v2552_v21 }
 0x1c2   : > { %v511_v19 = vpop.permute.xlu1 %510 }
 0x1c3   : > { %v516_v20 = vsel %vm361_vm2, %v511_v19, 0  ;;  %2115 = vmatmul.mubr.msk.bf16.vlgmr.msra.gmra.mrb[8].mxu1 %vm361_vm2, %v2798_v63 }
 0x1c4   : > { %2119 = vmatpush3.bf16.xpose.msra.mxu1 %v516_v20  ;;  %2120 = vmatprep.mubr.msk.bf16.mxu1 %vm2553_vm1, %v2552_v21 }
 0x1c5   : > { %2130 = vmatprep.subr.bf16.mxu1 %v2552_v21 }
 0x1cb   : > { %2121 = vmatmul.mubr.msk.bf16.vlgmr.msra.gmra.mrb[12].mxu1 %vm361_vm2, %v2810_v12 }
 0x1cc   : > { %2132 = vmatprep.mubr.msk.bf16.mxu1 %vm2553_vm1, %v2552_v21 }
 0x286   : > { %v402_v22 = vpop.f32.mrb[0].mxu1 }
 0x287   : > { %v2104_v23 = vpop.f32.mrb[1].mxu1  ;;  %v559_v24 = vsel %vm361_vm2, %v402_v22, -inf }
 0x288   : > { %560 = vmax.xlane.f32.xlu0 %v559_v24  ;;  %v405_v25 = vpop.f32.mrb[2].mxu1 }
 0x289   : > { %v2105_v26 = vpop.f32.mrb[3].mxu1  ;;  %v562_v27 = vsel %vm361_vm2, %v405_v25, -inf }
 0x28a   : > { %563 = vmax.xlane.f32.xlu1 %v562_v27 }
 0x28e   : > { %v452_v28 = vpop.f32.mrb[4].mxu1 }
 0x28f   : > { %v2110_v29 = vpop.f32.mrb[5].mxu1  ;;  %v565_v30 = vsel %vm361_vm2, %v452_v28, -inf }
 0x290   : > { %566 = vmax.xlane.f32.xlu0 %v565_v30  ;;  %v455_v33 = vpop.f32.mrb[6].mxu1 }
 0x291   : > { %v2111_v34 = vpop.f32.mrb[7].mxu1  ;;  %v568_v38 = vsel %vm361_vm2, %v455_v33, -inf }
 0x294   : > { %569 = vmax.xlane.f32.xlu0 %v568_v38 }
 0x296   : > { %v502_v39 = vpop.f32.mrb[8].mxu1 }
 0x297   : > { %v2116_v40 = vpop.f32.mrb[9].mxu1  ;;  %v571_v41 = vsel %vm361_vm2, %v502_v39, -inf }
 0x298   : > { %572 = vmax.xlane.f32.xlu1 %v571_v41  ;;  %v505_v42 = vpop.f32.mrb[10].mxu1 }
 0x299   : > { %v2117_v43 = vpop.f32.mrb[11].mxu1  ;;  %v574_v46 = vsel %vm361_vm2, %v505_v42, -inf }
 0x29a   : > { %575 = vmax.xlane.f32.xlu0 %v574_v46 }
 0x29e   : > { %v552_v47 = vpop.f32.mrb[12].mxu1 }
 0x29f   : > { %v2122_v51 = vpop.f32.mrb[13].mxu1  ;;  %v577_v52 = vsel %vm361_vm2, %v552_v47, -inf }
 0x2a0   : > { %578 = vmax.xlane.f32.xlu1 %v577_v52  ;;  %v555_v53 = vpop.f32.mrb[14].mxu1 }
 0x2a1   : > { %v2123_v55 = vpop.f32.mrb[15].mxu1  ;;  %v580_v56 = vsel %vm361_vm2, %v555_v53, -inf }
 0x2a2   : > { %581 = vmax.xlane.f32.xlu0 %v580_v56 }
 0x2b1   : > { %651 = vrot.lane.b32.xlu1 %v2770_v35, %s2555_s9 }
 0x2b5   : > { %745 = vrot.lane.b32.xlu1 %v2794_v61, %s2555_s9 }
 0x2b8   : > { %698 = vrot.lane.b32.xlu0 %v2782_v48, %s2555_s9 }
 0x2b9   : > { %792 = vrot.lane.b32.xlu1 %v2806_v10, %s2555_s9 }
 0x315   : > { %v561_v57 = vpop.xlane.xlu0 %560 }
 0x316   : > { %v583_v59 = vsub.f32 %v402_v22, %v561_v57 }
 0x317   : > { %v564_v60 = vpop.xlane.xlu1 %563 }
 0x318   : > { %v591_v0 = vmul.f32 1.442695, %v583_v59  ;;  %v584_v1 = vsub.f32 %v405_v25, %v564_v60 }
 0x31a   : > { %2321 = vpow2.f32 %v591_v0  ;;  %v593_v2 = vmul.f32 1.442695, %v584_v1 }
 0x31c   : > { %2323 = vpow2.f32 %v593_v2 }
 0x31d   : > { %v567_v4 = vpop.xlane.xlu0 %566 }
 0x31e   : > { %v585_v5 = vsub.f32 %v452_v28, %v567_v4 }
 0x320   : > { %v595_v6 = vmul.f32 1.442695, %v585_v5 }
 0x321   : > { %v570_v8 = vpop.xlane.xlu0 %569 }
 0x322   : > { %2325 = vpow2.f32 %v595_v6  ;;  %v586_v9 = vsub.f32 %v455_v33, %v570_v8 }
 0x324   : > { %v2854_v13 = vpop.eup %2321  ;;  %v597_v14 = vmul.f32 1.442695, %v586_v9 }
 0x325   : > { %v573_v15 = vpop.xlane.xlu1 %572  ;;  %v607_v16 = vsel %vm361_vm2, %v2854_v13, 0.0 }
 0x326   : > { %v2858_v17 = vpop.eup %2323  ;;  %2327 = vpow2.f32 %v597_v14  ;;  %v587_v18 = vsub.f32 %v502_v39, %v573_v15  ;;  %608 = vadd.xlane.f32.xlu1 %v607_v16 }
 0x327   : > { %v576_v19 = vpop.xlane.xlu0 %575  ;;  %v610_v20 = vsel %vm361_vm2, %v2858_v17, 0.0 }
 0x328   : > { %v599_v22 = vmul.f32 1.442695, %v587_v18  ;;  %v588_v23 = vsub.f32 %v505_v42, %v576_v19  ;;  %611 = vadd.xlane.f32.xlu0 %v610_v20 }
 0x32a   : > { %2329 = vpow2.f32 %v599_v22  ;;  %v601_v24 = vmul.f32 1.442695, %v588_v23 }
 0x32c   : > { %v2862_v25 = vpop.eup %2325  ;;  %2331 = vpow2.f32 %v601_v24 }
 0x32d   : > { %v579_v26 = vpop.xlane.xlu1 %578  ;;  %v613_v27 = vsel %vm361_vm2, %v2862_v25, 0.0 }
 0x32e   : > { %v589_v28 = vsub.f32 %v552_v47, %v579_v26  ;;  %614 = vadd.xlane.f32.xlu1 %v613_v27 }
 0x32f   : > { %v582_v29 = vpop.xlane.xlu0 %581 }
 0x330   : > { %v2328_v30 = vpop.eup %2327  ;;  %v603_v33 = vmul.f32 1.442695, %v589_v28  ;;  %v590_v34 = vsub.f32 %v555_v53, %v582_v29 }
 0x331   : > { %v652_v38 = vpop.permute.xlu1 %651  ;;  %v616_v39 = vsel %vm361_vm2, %v2328_v30, 0.0 }
 0x332   : > { %2333 = vpow2.f32 %v603_v33  ;;  %v605_v40 = vmul.f32 1.442695, %v590_v34  ;;  %2125 = vmatpush3.bf16.msra.mxu0 %v652_v38  ;;  %617 = vadd.xlane.f32.xlu0 %v616_v39 }
 0x333   : > { %v699_v41 = vpop.permute.xlu0 %698  ;;  %2136 = vmatprep.subr.bf16.mxu0 %v2552_v21 }
 0x334   : > { %v2330_v42 = vpop.eup %2329  ;;  %2335 = vpow2.f32 %v605_v40  ;;  %2131 = vmatpush3.bf16.msra.mxu1 %v699_v41 }
 0x335   : > { %v619_v43 = vsel %vm361_vm2, %v2330_v42, 0.0  ;;  %2142 = vmatprep.subr.bf16.mxu1 %v2552_v21  ;;  %v746_v56 = vpop.permute.xlu1 %745 }
 0x336   : > { %v2332_v46 = vpop.eup %2331  ;;  %620 = vadd.xlane.f32.xlu1 %v619_v43 }
 0x337   : > { %v622_v47 = vsel %vm361_vm2, %v2332_v46, 0.0 }
 0x338   : > { %623 = vadd.xlane.f32.xlu0 %v622_v47 }
 0x339   : > { %v793_v57 = vpop.permute.xlu1 %792 }
 0x33c   : > { %v2871_v51 = vpop.eup %2333 }
 0x33d   : > { %v625_v52 = vsel %vm361_vm2, %v2871_v51, 0.0 }
 0x33e   : > { %v2875_v53 = vpop.eup %2335  ;;  %626 = vadd.xlane.f32.xlu1 %v625_v52 }
 0x33f   : > { %v628_v55 = vsel %vm361_vm2, %v2875_v53, 0.0 }
 0x340   : > { %629 = vadd.xlane.f32.xlu0 %v628_v55 }
 0x34f   : > { %894 = vrot.lane.b32.xlu1 %v2782_v48, %s2556_s4 }
 0x353   : > { %892 = vrot.lane.b32.xlu1 %v2786_v50, %s2557_s25 }
 0x356   : > { %842 = vrot.lane.b32.xlu0 %v2770_v35, %s2556_s4 }
 0x357   : > { %998 = vrot.lane.b32.xlu1 %v2806_v10, %s2556_s4 }
 0x35a   : > { %840 = vrot.lane.b32.xlu0 %v2774_v37, %s2557_s25 }
 0x35b   : > { %996 = vrot.lane.b32.xlu1 %v2810_v12, %s2557_s25 }
 0x35e   : > { %946 = vrot.lane.b32.xlu0 %v2794_v61, %s2556_s4 }
 0x362   : > { %944 = vrot.lane.b32.xlu0 %v2798_v63, %s2557_s25 }
 0x3b3   : > { %v609_v59 = vpop.xlane.xlu1 %608 }
 0x3b4   : > { %2337 = vrcp.f32 %v609_v59 }
 0x3b5   : > { %v612_v60 = vpop.xlane.xlu0 %611 }
 0x3b6   : > { %2339 = vrcp.f32 %v612_v60 }
 0x3bb   : > { %v615_v0 = vpop.xlane.xlu1 %614 }
 0x3bc   : > { %2341 = vrcp.f32 %v615_v0 }
 0x3be   : > { %v2338_v1 = vpop.eup %2337 }
 0x3bf   : > { %v618_v2 = vpop.xlane.xlu0 %617  ;;  %v639_v5 = vmul.f32 %v2338_v1, %v2854_v13 }
 0x3c0   : > { %v2340_v4 = vpop.eup %2339  ;;  %2343 = vrcp.f32 %v618_v2 }
 0x3c1   : > { %v640_v6 = vmul.f32 %v2340_v4, %v2858_v17 }
 0x3c3   : > { %v647_v8 = vpack.c.bf16 %v640_v6, %v639_v5  ;;  %v621_v9 = vpop.xlane.xlu1 %620 }
 0x3c4   : > { %2345 = vrcp.f32 %v621_v9 }
 0x3c5   : > { %2127 = vmatmul.mubr.msk.bf16.vlgmr.msra.gmra.mrb[16].mxu0 %vm361_vm2, %v647_v8  ;;  %v624_v14 = vpop.xlane.xlu0 %623 }
 0x3c6   : > { %2137 = vmatpush3.bf16.msra.mxu0 %v746_v56  ;;  %2347 = vrcp.f32 %v624_v14  ;;  %2138 = vmatprep.mubr.msk.bf16.mxu0 %vm2553_vm1, %v2552_v21  ;;  %v2342_v15 = vpop.eup %2341 }
 0x3c7   : > { %2148 = vmatprep.subr.bf16.mxu0 %v2552_v21  ;;  %v641_v18 = vmul.f32 %v2342_v15, %v2862_v25 }
 0x3ca   : > { %v2344_v16 = vpop.eup %2343 }
 0x3cb   : > { %v642_v13 = vmul.f32 %v2344_v16, %v2328_v30  ;;  %v627_v19 = vpop.xlane.xlu1 %626 }
 0x3cc   : > { %2349 = vrcp.f32 %v627_v19 }
 0x3cd   : > { %v630_v17 = vpop.xlane.xlu0 %629  ;;  %v648_v20 = vpack.c.bf16 %v642_v13, %v641_v18 }
 0x3ce   : > { %v2346_v22 = vpop.eup %2345  ;;  %2351 = vrcp.f32 %v630_v17 }
 0x3cf   : > { %2133 = vmatmul.mubr.msk.bf16.vlgmr.msra.gmra.mrb[16].mxu1 %vm361_vm2, %v648_v20  ;;  %v643_v24 = vmul.f32 %v2346_v22, %v2330_v42  ;;  %v895_v33 = vpop.permute.xlu1 %894 }
 0x3d0   : > { %v2348_v23 = vpop.eup %2347  ;;  %2143 = vmatpush3.bf16.msra.mxu1 %v793_v57  ;;  %2144 = vmatprep.mubr.msk.bf16.mxu1 %vm2553_vm1, %v2552_v21  ;;  %v900_v43 = vsel %vm361_vm2, %v895_v33, 0 }
 0x3d1   : > { %v644_v26 = vmul.f32 %v2348_v23, %v2332_v46  ;;  %v843_v27 = vpop.permute.xlu0 %842  ;;  %2154 = vmatprep.subr.bf16.mxu1 %v2552_v21 }
 0x3d2   : > { %v848_v28 = vsel %vm361_vm2, %v843_v27, 0 }
 0x3d3   : > { %v649_v25 = vpack.c.bf16 %v644_v26, %v643_v24  ;;  %v893_v42 = vpop.permute.xlu1 %892 }
 0x3d5   : > { %2139 = vmatmul.mubr.msk.bf16.vlgmr.msra.gmra.mrb[20].mxu0 %vm361_vm2, %v649_v25  ;;  %v841_v29 = vpop.permute.xlu0 %840 }
 0x3d6   : > { %v2350_v30 = vpop.eup %2349  ;;  %2149 = vmatpush3.bf16.xpose.msra.mxu0 %v848_v28  ;;  %2150 = vmatprep.mubr.msk.bf16.mxu0 %vm2553_vm1, %v2552_v21 }
 0x3d7   : > { %2160 = vmatprep.subr.bf16.mxu0 %v2552_v21  ;;  %v645_v38 = vmul.f32 %v2350_v30, %v2871_v51  ;;  %v999_v47 = vpop.permute.xlu1 %998 }
 0x3d8   : > { %v2352_v34 = vpop.eup %2351  ;;  %v1004_v52 = vsel %vm361_vm2, %v999_v47, 0 }
 0x3d9   : > { %v646_v39 = vmul.f32 %v2352_v34, %v2875_v53  ;;  %v947_v40 = vpop.permute.xlu0 %946 }
 0x3da   : > { %v952_v46 = vsel %vm361_vm2, %v947_v40, 0 }
 0x3db   : > { %v650_v41 = vpack.c.bf16 %v646_v39, %v645_v38  ;;  %v997_v53 = vpop.permute.xlu1 %996 }
 0x3dd   : > { %2145 = vmatmul.mubr.msk.bf16.vlgmr.msra.gmra.mrb[20].mxu1 %vm361_vm2, %v650_v41  ;;  %2151 = vmatmul.mubr.msk.bf16.vlgmr.msra.gmra.mrb[24].mxu0 %vm361_vm2, %v841_v29  ;;  %v945_v51 = vpop.permute.xlu0 %944 }
 0x3de   : > { %2155 = vmatpush3.bf16.xpose.msra.mxu1 %v900_v43  ;;  %2161 = vmatpush3.bf16.xpose.msra.mxu0 %v952_v46 }
 0x3df   : > { %2156 = vmatprep.mubr.msk.bf16.mxu1 %vm2553_vm1, %v2552_v21  ;;  %2162 = vmatprep.mubr.msk.bf16.mxu0 %vm2553_vm1, %v2552_v21 }
 0x3e0   : > { %2166 = vmatprep.subr.bf16.mxu1 %v2552_v21  ;;  %2172 = vmatprep.subr.bf16.mxu0 %v2552_v21 }
 0x3e5   : > { %2157 = vmatmul.mubr.msk.bf16.vlgmr.msra.gmra.mrb[24].mxu1 %vm361_vm2, %v893_v42  ;;  %2163 = vmatmul.mubr.msk.bf16.vlgmr.msra.gmra.mrb[28].mxu0 %vm361_vm2, %v945_v51 }
 0x3e6   : > { %2167 = vmatpush3.bf16.xpose.msra.mxu1 %v1004_v52  ;;  %2168 = vmatprep.mubr.msk.bf16.mxu1 %vm2553_vm1, %v2552_v21 }
 0x3e7   : > { %2178 = vmatprep.subr.bf16.mxu1 %v2552_v21  ;;  %2174 = vmatprep.mubr.msk.bf16.mxu0 %vm2553_vm1, %v2552_v21 }
 0x3ed   : > { %2169 = vmatmul.mubr.msk.bf16.vlgmr.msra.gmra.mrb[28].mxu1 %vm361_vm2, %v997_v53 }
 0x3ee   : > { %2180 = vmatprep.mubr.msk.bf16.mxu1 %vm2553_vm1, %v2552_v21 }
 0x498   : > { %v2926_v55 = vpop.f32.mrb[16].mxu0 }
 0x499   : > { %v2128_v56 = vpop.f32.mrb[17].mxu0 }
 0x49a   : > { %v2928_v57 = vpop.f32.mrb[18].mxu0 }
 0x49b   : > { %v2129_v59 = vpop.f32.mrb[19].mxu0 }
 0x4a2   : > { %v2930_v60 = vpop.f32.mrb[16].mxu1 }
 0x4a3   : > { %v2134_v0 = vpop.f32.mrb[17].mxu1 }
 0x4a4   : > { %v2932_v1 = vpop.f32.mrb[18].mxu1 }
 0x4a5   : > { %v2135_v2 = vpop.f32.mrb[19].mxu1 }
 0x4a8   : > { %v2934_v4 = vpop.f32.mrb[20].mxu0 }
 0x4a9   : > { %v2140_v5 = vpop.f32.mrb[21].mxu0 }
 0x4aa   : > { %v2936_v6 = vpop.f32.mrb[22].mxu0 }
 0x4ab   : > { %v2141_v8 = vpop.f32.mrb[23].mxu0 }
 0x4b0   : > { %v2938_v9 = vpop.f32.mrb[20].mxu1  ;;  %v884_v14 = vpop.f32.mrb[24].mxu0 }
 0x4b1   : > { %v2146_v15 = vpop.f32.mrb[21].mxu1  ;;  %v2152_v16 = vpop.f32.mrb[25].mxu0  ;;  %v1047_v18 = vsel %vm361_vm2, %v884_v14, -inf }
 0x4b2   : > { %1048 = vmax.xlane.f32.xlu0 %v1047_v18  ;;  %v2941_v13 = vpop.f32.mrb[22].mxu1  ;;  %v887_v19 = vpop.f32.mrb[26].mxu0 }
 0x4b3   : > { %v2147_v17 = vpop.f32.mrb[23].mxu1  ;;  %v2153_v20 = vpop.f32.mrb[27].mxu0  ;;  %v1050_v22 = vsel %vm361_vm2, %v887_v19, -inf }
 0x4b4   : > { %1051 = vmax.xlane.f32.xlu1 %v1050_v22 }
 0x4b8   : > { %v936_v23 = vpop.f32.mrb[24].mxu1  ;;  %v988_v24 = vpop.f32.mrb[28].mxu0 }
 0x4b9   : > { %v2158_v26 = vpop.f32.mrb[25].mxu1  ;;  %v2164_v27 = vpop.f32.mrb[29].mxu0  ;;  %v1059_v25 = vsel %vm361_vm2, %v988_v24, -inf  ;;  %v1053_v28 = vsel %vm361_vm2, %v936_v23, -inf }
 0x4ba   : > { %1060 = vmax.xlane.f32.xlu1 %v1059_v25  ;;  %v991_v29 = vpop.f32.mrb[30].mxu0  ;;  %1054 = vmax.xlane.f32.xlu0 %v1053_v28  ;;  %v939_v30 = vpop.f32.mrb[26].mxu1 }
 0x4bb   : > { %v2159_v33 = vpop.f32.mrb[27].mxu1  ;;  %v2165_v34 = vpop.f32.mrb[31].mxu0  ;;  %v1056_v38 = vsel %vm361_vm2, %v939_v30, -inf  ;;  %v1062_v41 = vsel %vm361_vm2, %v991_v29, -inf }
 0x4be   : > { %1057 = vmax.xlane.f32.xlu0 %v1056_v38 }
 0x4c0   : > { %v1040_v39 = vpop.f32.mrb[28].mxu1 }
 0x4c1   : > { %v2170_v40 = vpop.f32.mrb[29].mxu1  ;;  %v1065_v42 = vsel %vm361_vm2, %v1040_v39, -inf }
 0x4c2   : > { %1063 = vmax.xlane.f32.xlu0 %v1062_v41  ;;  %1066 = vmax.xlane.f32.xlu1 %v1065_v42  ;;  %v1043_v43 = vpop.f32.mrb[30].mxu1 }
 0x4c3   : > { %v2171_v46 = vpop.f32.mrb[31].mxu1  ;;  %v1068_v47 = vsel %vm361_vm2, %v1043_v43, -inf }
 0x4c6   : > { %1069 = vmax.xlane.f32.xlu0 %v1068_v47 }
 0x4d3   : > { %1139 = vrot.lane.b32.xlu1 %v2770_v35, %s2558_s5 }
 0x4d7   : > { %1233 = vrot.lane.b32.xlu1 %v2794_v61, %s2558_s5 }
 0x4db   : > { %1280 = vrot.lane.b32.xlu1 %v2806_v10, %s2558_s5 }
 0x4dc   : > { %1186 = vrot.lane.b32.xlu0 %v2782_v48, %s2558_s5 }
 0x53f   : > { %v1049_v51 = vpop.xlane.xlu0 %1048 }
 0x540   : > { %v1071_v52 = vsub.f32 %v884_v14, %v1049_v51 }
 0x541   : > { %v1052_v53 = vpop.xlane.xlu1 %1051 }
 0x542   : > { %v1079_v56 = vmul.f32 1.442695, %v1071_v52  ;;  %v1072_v59 = vsub.f32 %v887_v19, %v1052_v53 }
 0x544   : > { %2353 = vpow2.f32 %v1079_v56  ;;  %v1081_v0 = vmul.f32 1.442695, %v1072_v59 }
 0x546   : > { %2355 = vpow2.f32 %v1081_v0 }
 0x547   : > { %v1061_v2 = vpop.xlane.xlu1 %1060  ;;  %v1055_v5 = vpop.xlane.xlu0 %1054 }
 0x548   : > { %v1075_v8 = vsub.f32 %v988_v24, %v1061_v2  ;;  %v1073_v15 = vsub.f32 %v936_v23, %v1055_v5 }
 0x54a   : > { %v1083_v16 = vmul.f32 1.442695, %v1073_v15  ;;  %v1087_v18 = vmul.f32 1.442695, %v1075_v8 }
 0x54b   : > { %v1058_v17 = vpop.xlane.xlu0 %1057 }
 0x54c   : > { %v1074_v20 = vsub.f32 %v939_v30, %v1058_v17  ;;  %2357 = vpow2.f32 %v1083_v16 }
 0x54d   : > { %2359 = vpow2.f32 %v1087_v18 }
 0x54e   : > { %v2958_v22 = vpop.eup %2353  ;;  %v1085_v26 = vmul.f32 1.442695, %v1074_v20 }
 0x54f   : > { %v1064_v14 = vpop.xlane.xlu0 %1063  ;;  %v1067_v27 = vpop.xlane.xlu1 %1066  ;;  %v1095_v19 = vsel %vm361_vm2, %v2958_v22, 0.0 }
 0x550   : > { %v2962_v25 = vpop.eup %2355  ;;  %2361 = vpow2.f32 %v1085_v26  ;;  %v1076_v28 = vsub.f32 %v991_v29, %v1064_v14  ;;  %v1077_v24 = vsub.f32 %v1040_v39, %v1067_v27  ;;  %1096 = vadd.xlane.f32.xlu1 %v1095_v19 }
 0x551   : > { %v1098_v23 = vsel %vm361_vm2, %v2962_v25, 0.0 }
 0x552   : > { %v1089_v30 = vmul.f32 1.442695, %v1076_v28  ;;  %v1091_v33 = vmul.f32 1.442695, %v1077_v24  ;;  %1099 = vadd.xlane.f32.xlu0 %v1098_v23 }
 0x553   : > { %v1140_v34 = vpop.permute.xlu1 %1139  ;;  %v1070_v38 = vpop.xlane.xlu0 %1069 }
 0x554   : > { %2363 = vpow2.f32 %v1089_v30  ;;  %v1078_v40 = vsub.f32 %v1043_v43, %v1070_v38  ;;  %2173 = vmatpush3.bf16.msra.mxu0 %v1140_v34 }
 0x555   : > { %2365 = vpow2.f32 %v1091_v33  ;;  %2184 = vmatprep.subr.bf16.mxu0 %v2552_v21 }
 0x556   : > { %v1093_v41 = vmul.f32 1.442695, %v1078_v40  ;;  %v2358_v42 = vpop.eup %2357 }
 0x557   : > { %v1187_v46 = vpop.permute.xlu0 %1186  ;;  %v1101_v29 = vsel %vm361_vm2, %v2358_v42, 0.0  ;;  %v2360_v39 = vpop.eup %2359 }
 0x558   : > { %2367 = vpow2.f32 %v1093_v41  ;;  %2179 = vmatpush3.bf16.msra.mxu1 %v1187_v46  ;;  %1102 = vadd.xlane.f32.xlu1 %v1101_v29  ;;  %v1107_v43 = vsel %vm361_vm2, %v2360_v39, 0.0  ;;  %v1234_v5 = vpop.permute.xlu1 %1233 }
 0x559   : > { %2190 = vmatprep.subr.bf16.mxu1 %v2552_v21 }
 0x55a   : > { %v2362_v47 = vpop.eup %2361 }
 0x55b   : > { %v1104_v51 = vsel %vm361_vm2, %v2362_v47, 0.0 }
 0x55c   : > { %1105 = vadd.xlane.f32.xlu0 %v1104_v51  ;;  %1108 = vadd.xlane.f32.xlu1 %v1107_v43  ;;  %v1281_v8 = vpop.permute.xlu1 %1280 }
 0x55e   : > { %v2364_v52 = vpop.eup %2363 }
 0x55f   : > { %v2971_v53 = vpop.eup %2365  ;;  %v1110_v56 = vsel %vm361_vm2, %v2364_v52, 0.0 }
 0x560   : > { %v1113_v59 = vsel %vm361_vm2, %v2971_v53, 0.0  ;;  %1111 = vadd.xlane.f32.xlu0 %v1110_v56 }
 0x561   : > { %1114 = vadd.xlane.f32.xlu1 %v1113_v59 }
 0x562   : > { %v2368_v0 = vpop.eup %2367 }
 0x563   : > { %v1116_v2 = vsel %vm361_vm2, %v2368_v0, 0.0 }
 0x564   : > { %1117 = vadd.xlane.f32.xlu0 %v1116_v2 }
 0x572   : > { %1384 = vrot.lane.b32.xlu1 %v2782_v48, %s2559_s11 }
 0x576   : > { %1382 = vrot.lane.b32.xlu1 %v2786_v50, %s2560_s27 }
 0x57a   : > { %1486 = vrot.lane.b32.xlu1 %v2806_v10, %s2559_s11  ;;  %1333 = vrot.lane.b32.xlu0 %v2770_v35, %s2559_s11 }
 0x57e   : > { %1484 = vrot.lane.b32.xlu1 %v2810_v12, %s2560_s27  ;;  %1331 = vrot.lane.b32.xlu0 %v2774_v37, %s2560_s27 }
 0x582   : > { %1435 = vrot.lane.b32.xlu0 %v2794_v61, %s2559_s11 }
 0x586   : > { %1433 = vrot.lane.b32.xlu0 %v2798_v63, %s2560_s27 }
 0x5dd   : > { %v1097_v15 = vpop.xlane.xlu1 %1096 }
 0x5de   : > { %2369 = vrcp.f32 %v1097_v15 }
 0x5df   : > { %v1100_v48 = vpop.xlane.xlu0 %1099 }
 0x5e0   : > { %2371 = vrcp.f32 %v1100_v48 }
 0x5e5   : > { %v1103_v16 = vpop.xlane.xlu1 %1102 }
 0x5e6   : > { %2373 = vrcp.f32 %v1103_v16 }
 0x5e8   : > { %v2370_v50 = vpop.eup %2369 }
 0x5e9   : > { %v1106_v10 = vpop.xlane.xlu0 %1105  ;;  %v1109_v35 = vpop.xlane.xlu1 %1108  ;;  %v1127_v12 = vmul.f32 %v2370_v50, %v2958_v22 }
 0x5ea   : > { %v2372_v18 = vpop.eup %2371  ;;  %2375 = vrcp.f32 %v1106_v10 }
 0x5eb   : > { %v1128_v37 = vmul.f32 %v2372_v18, %v2962_v25  ;;  %2377 = vrcp.f32 %v1109_v35 }
 0x5ed   : > { %v1112_v61 = vpop.xlane.xlu0 %1111  ;;  %v1135_v63 = vpack.c.bf16 %v1128_v37, %v1127_v12 }
 0x5ee   : > { %v1115_v17 = vpop.xlane.xlu1 %1114  ;;  %2379 = vrcp.f32 %v1112_v61 }
 0x5ef   : > { %2175 = vmatmul.mubr.msk.bf16.vlgmr.msra.gmra.mrb[32].mxu0 %vm361_vm2, %v1135_v63  ;;  %2381 = vrcp.f32 %v1115_v17 }
 0x5f0   : > { %2185 = vmatpush3.bf16.msra.mxu0 %v1234_v5  ;;  %2186 = vmatprep.mubr.msk.bf16.mxu0 %vm2553_vm1, %v2552_v21  ;;  %v2374_v26 = vpop.eup %2373 }
 0x5f1   : > { %v1118_v20 = vpop.xlane.xlu0 %1117  ;;  %2196 = vmatprep.subr.bf16.mxu0 %v2552_v21  ;;  %v1129_v14 = vmul.f32 %v2374_v26, %v2358_v42 }
 0x5f2   : > { %2383 = vrcp.f32 %v1118_v20  ;;  %v1385_v34 = vpop.permute.xlu1 %1384 }
 0x5f3   : > { %v1390_v51 = vsel %vm361_vm2, %v1385_v34, 0 }
 0x5f4   : > { %v2376_v22 = vpop.eup %2375 }
 0x5f5   : > { %v1130_v27 = vmul.f32 %v2376_v22, %v2362_v47  ;;  %v2378_v19 = vpop.eup %2377  ;;  %v1334_v25 = vpop.permute.xlu0 %1333 }
 0x5f6   : > { %v1131_v23 = vmul.f32 %v2378_v19, %v2360_v39  ;;  %v1339_v29 = vsel %vm361_vm2, %v1334_v25, 0  ;;  %v1383_v47 = vpop.permute.xlu1 %1382 }
 0x5f7   : > { %v1136_v28 = vpack.c.bf16 %v1130_v27, %v1129_v14 }
 0x5f8   : > { %v2380_v24 = vpop.eup %2379 }
 0x5f9   : > { %v1132_v30 = vmul.f32 %v2380_v24, %v2364_v52  ;;  %2181 = vmatmul.mubr.msk.bf16.vlgmr.msra.gmra.mrb[32].mxu1 %vm361_vm2, %v1136_v28  ;;  %v2382_v33 = vpop.eup %2381  ;;  %v1332_v41 = vpop.permute.xlu0 %1331 }
 0x5fa   : > { %2191 = vmatpush3.bf16.msra.mxu1 %v1281_v8  ;;  %2192 = vmatprep.mubr.msk.bf16.mxu1 %vm2553_vm1, %v2552_v21  ;;  %v1133_v42 = vmul.f32 %v2382_v33, %v2971_v53  ;;  %v1487_v53 = vpop.permute.xlu1 %1486 }
 0x5fb   : > { %v1137_v38 = vpack.c.bf16 %v1132_v30, %v1131_v23  ;;  %2202 = vmatprep.subr.bf16.mxu1 %v2552_v21  ;;  %v1492_v56 = vsel %vm361_vm2, %v1487_v53, 0 }
 0x5fc   : > { %v2384_v40 = vpop.eup %2383 }
 0x5fd   : > { %v1134_v46 = vmul.f32 %v2384_v40, %v2368_v0  ;;  %2187 = vmatmul.mubr.msk.bf16.vlgmr.msra.gmra.mrb[36].mxu0 %vm361_vm2, %v1137_v38  ;;  %v1436_v43 = vpop.permute.xlu0 %1435 }
 0x5fe   : > { %2197 = vmatpush3.bf16.xpose.msra.mxu0 %v1339_v29  ;;  %2198 = vmatprep.mubr.msk.bf16.mxu0 %vm2553_vm1, %v2552_v21  ;;  %v1441_v52 = vsel %vm361_vm2, %v1436_v43, 0  ;;  %v1485_v0 = vpop.permute.xlu1 %1484 }
 0x5ff   : > { %v1138_v39 = vpack.c.bf16 %v1134_v46, %v1133_v42  ;;  %2208 = vmatprep.subr.bf16.mxu0 %v2552_v21 }
 0x601   : > { %2193 = vmatmul.mubr.msk.bf16.vlgmr.msra.gmra.mrb[36].mxu1 %vm361_vm2, %v1138_v39  ;;  %v1434_v59 = vpop.permute.xlu0 %1433 }
 0x602   : > { %2204 = vmatprep.mubr.msk.bf16.mxu1 %vm2553_vm1, %v2552_v21 }
 0x603   : > { %2203 = vmatpush3.bf16.xpose.msra.mxu1 %v1390_v51 }
 0x604   : > { %2214 = vmatprep.subr.bf16.mxu1 %v2552_v21 }
 0x605   : > { %2199 = vmatmul.mubr.msk.bf16.vlgmr.msra.gmra.mrb[40].mxu0 %vm361_vm2, %v1332_v41 }
 0x606   : > { %2209 = vmatpush3.bf16.xpose.msra.mxu0 %v1441_v52  ;;  %2210 = vmatprep.mubr.msk.bf16.mxu0 %vm2553_vm1, %v2552_v21 }
 0x607   : > { %2220 = vmatprep.subr.bf16.mxu0 %v2552_v21 }
 0x60a   : > { %2205 = vmatmul.mubr.msk.bf16.vlgmr.msra.gmra.mrb[40].mxu1 %vm361_vm2, %v1383_v47 }
 0x60b   : > { %2215 = vmatpush3.bf16.xpose.msra.mxu1 %v1492_v56  ;;  %2216 = vmatprep.mubr.msk.bf16.mxu1 %vm2553_vm1, %v2552_v21 }
 0x60c   : > { %2226 = vmatprep.subr.bf16.mxu1 %v2552_v21 }
 0x60d   : > { %2211 = vmatmul.mubr.msk.bf16.vlgmr.msra.gmra.mrb[44].mxu0 %vm361_vm2, %v1434_v59 }
 0x60e   : > { %2221 = vmatpush3.bf16.msra.mxu0 %v1327_v36  ;;  %2222 = vmatprep.mubr.msk.bf16.mxu0 %vm2553_vm1, %v2552_v21 }
 0x60f   : > { %2232 = vmatprep.subr.bf16.mxu0 %v2552_v21 }
 0x612   : > { %2217 = vmatmul.mubr.msk.bf16.vlgmr.msra.gmra.mrb[44].mxu1 %vm361_vm2, %v1485_v0 }
 0x613   : > { %2227 = vmatpush3.bf16.msra.mxu1 %v1328_v49  ;;  %2228 = vmatprep.mubr.msk.bf16.mxu1 %vm2553_vm1, %v2552_v21 }
 0x614   : > { %2238 = vmatprep.subr.bf16.mxu1 %v2552_v21 }
 0x6c2   : > { %v3030_v2 = vpop.f32.mrb[32].mxu0 }
 0x6c3   : > { %v2176_v31 = vpop.f32.mrb[33].mxu0 }
 0x6c4   : > { %v3032_v32 = vpop.f32.mrb[34].mxu0 }
 0x6c5   : > { %v2177_v36 = vpop.f32.mrb[35].mxu0 }
 0x6cc   : > { %v3034_v5 = vpop.f32.mrb[32].mxu1 }
 0x6cd   : > { %v2182_v8 = vpop.f32.mrb[33].mxu1 }
 0x6ce   : > { %v3036_v15 = vpop.f32.mrb[34].mxu1 }
 0x6cf   : > { %v2183_v48 = vpop.f32.mrb[35].mxu1 }
 0x6d0   : > { %v3038_v16 = vpop.f32.mrb[36].mxu0 }
 0x6d1   : > { %v2188_v44 = vpop.f32.mrb[37].mxu0 }
 0x6d2   : > { %v3040_v45 = vpop.f32.mrb[38].mxu0 }
 0x6d3   : > { %v2189_v49 = vpop.f32.mrb[39].mxu0 }
 0x6d4   : > { %v3042_v50 = vpop.f32.mrb[36].mxu1 }
 0x6d5   : > { %v2194_v10 = vpop.f32.mrb[37].mxu1 }
 0x6d6   : > { %v3044_v18 = vpop.f32.mrb[38].mxu1 }
 0x6d7   : > { %v2195_v35 = vpop.f32.mrb[39].mxu1 }
 0x6d8   : > { %v1375_v12 = vpop.f32.mrb[40].mxu0 }
 0x6d9   : > { %v2200_v37 = vpop.f32.mrb[41].mxu0  ;;  %v1535_v61 = vsel %vm361_vm2, %v1375_v12, -inf }
 0x6da   : > { %1536 = vmax.xlane.f32.xlu0 %v1535_v61  ;;  %v1378_v63 = vpop.f32.mrb[42].mxu0 }
 0x6db   : > { %v2201_v17 = vpop.f32.mrb[43].mxu0  ;;  %v1538_v20 = vsel %vm361_vm2, %v1378_v63, -inf }
 0x6dc   : > { %1539 = vmax.xlane.f32.xlu1 %v1538_v20 }
 0x6dd   : > { %v1426_v26 = vpop.f32.mrb[40].mxu1 }
 0x6de   : > { %v2206_v22 = vpop.f32.mrb[41].mxu1  ;;  %v1541_v14 = vsel %vm361_vm2, %v1426_v26, -inf }
 0x6df   : > { %1542 = vmax.xlane.f32.xlu0 %v1541_v14  ;;  %v1429_v27 = vpop.f32.mrb[42].mxu1 }
 0x6e0   : > { %v2207_v19 = vpop.f32.mrb[43].mxu1  ;;  %v1477_v25 = vpop.f32.mrb[44].mxu0  ;;  %v1544_v30 = vsel %vm361_vm2, %v1429_v27, -inf }
 0x6e1   : > { %v2212_v28 = vpop.f32.mrb[45].mxu0  ;;  %v1547_v24 = vsel %vm361_vm2, %v1477_v25, -inf }
 0x6e2   : > { %1548 = vmax.xlane.f32.xlu1 %v1547_v24  ;;  %v1480_v23 = vpop.f32.mrb[46].mxu0 }
 0x6e3   : > { %1545 = vmax.xlane.f32.xlu0 %v1544_v30  ;;  %v2213_v33 = vpop.f32.mrb[47].mxu0  ;;  %v1550_v40 = vsel %vm361_vm2, %v1480_v23, -inf }
 0x6e5   : > { %v1528_v34 = vpop.f32.mrb[44].mxu1 }
 0x6e6   : > { %v2218_v38 = vpop.f32.mrb[45].mxu1  ;;  %v1553_v41 = vsel %vm361_vm2, %v1528_v34, -inf }
 0x6e7   : > { %1551 = vmax.xlane.f32.xlu0 %v1550_v40  ;;  %1554 = vmax.xlane.f32.xlu1 %v1553_v41  ;;  %v1531_v42 = vpop.f32.mrb[46].mxu1 }
 0x6e8   : > { %v2219_v46 = vpop.f32.mrb[47].mxu1  ;;  %v1556_v29 = vsel %vm361_vm2, %v1531_v42, -inf }
 0x6eb   : > { %1557 = vmax.xlane.f32.xlu0 %v1556_v29 }
 0x767   : > { %v1537_v39 = vpop.xlane.xlu0 %1536 }
 0x768   : > { %v1559_v47 = vsub.f32 %v1375_v12, %v1537_v39 }
 0x769   : > { %v1540_v51 = vpop.xlane.xlu1 %1539 }
 0x76a   : > { %v1567_v43 = vmul.f32 1.442695, %v1559_v47  ;;  %v1560_v52 = vsub.f32 %v1378_v63, %v1540_v51 }
 0x76c   : > { %2385 = vpow2.f32 %v1567_v43  ;;  %v1569_v53 = vmul.f32 1.442695, %v1560_v52  ;;  %v1543_v56 = vpop.xlane.xlu0 %1542 }
 0x76d   : > { %v1561_v59 = vsub.f32 %v1426_v26, %v1543_v56 }
 0x76e   : > { %2387 = vpow2.f32 %v1569_v53 }
 0x76f   : > { %v1571_v0 = vmul.f32 1.442695, %v1561_v59  ;;  %v1549_v31 = vpop.xlane.xlu1 %1548 }
 0x770   : > { %v1563_v36 = vsub.f32 %v1477_v25, %v1549_v31  ;;  %v1546_v8 = vpop.xlane.xlu0 %1545 }
 0x771   : > { %2389 = vpow2.f32 %v1571_v0  ;;  %v1562_v48 = vsub.f32 %v1429_v27, %v1546_v8 }
 0x772   : > { %v1575_v44 = vmul.f32 1.442695, %v1563_v36 }
 0x773   : > { %v1573_v49 = vmul.f32 1.442695, %v1562_v48 }
 0x774   : > { %2391 = vpow2.f32 %v1575_v44  ;;  %v1552_v10 = vpop.xlane.xlu0 %1551  ;;  %v1555_v35 = vpop.xlane.xlu1 %1554 }
 0x775   : > { %2393 = vpow2.f32 %v1573_v49  ;;  %v1564_v12 = vsub.f32 %v1480_v23, %v1552_v10  ;;  %v1565_v37 = vsub.f32 %v1528_v34, %v1555_v35 }
 0x776   : > { %v2386_v61 = vpop.eup %2385 }
 0x777   : > { %v1577_v63 = vmul.f32 1.442695, %v1564_v12  ;;  %v1579_v17 = vmul.f32 1.442695, %v1565_v37  ;;  %v1583_v20 = vsel %vm361_vm2, %v2386_v61, 0.0 }
 0x778   : > { %v2388_v26 = vpop.eup %2387  ;;  %v1558_v22 = vpop.xlane.xlu0 %1557  ;;  %1584 = vadd.xlane.f32.xlu1 %v1583_v20 }
 0x779   : > { %2395 = vpow2.f32 %v1577_v63  ;;  %v1566_v14 = vsub.f32 %v1531_v42, %v1558_v22  ;;  %v1586_v27 = vsel %vm361_vm2, %v2388_v26, 0.0 }
 0x77a   : > { %2397 = vpow2.f32 %v1579_v17  ;;  %1587 = vadd.xlane.f32.xlu0 %v1586_v27 }
 0x77b   : > { %v2390_v19 = vpop.eup %2389  ;;  %v1581_v25 = vmul.f32 1.442695, %v1566_v14 }
 0x77c   : > { %v1589_v28 = vsel %vm361_vm2, %v2390_v19, 0.0 }
 0x77d   : > { %2399 = vpow2.f32 %v1581_v25  ;;  %1590 = vadd.xlane.f32.xlu1 %v1589_v28 }
 0x77e   : > { %v2392_v24 = vpop.eup %2391 }
 0x77f   : > { %v2394_v23 = vpop.eup %2393  ;;  %v1595_v30 = vsel %vm361_vm2, %v2392_v24, 0.0 }
 0x780   : > { %v1592_v33 = vsel %vm361_vm2, %v2394_v23, 0.0 }
 0x781   : > { %1596 = vadd.xlane.f32.xlu1 %v1595_v30  ;;  %1593 = vadd.xlane.f32.xlu0 %v1592_v33 }
 0x783   : > { %v2396_v34 = vpop.eup %2395 }
 0x784   : > { %v2398_v38 = vpop.eup %2397  ;;  %v1598_v40 = vsel %vm361_vm2, %v2396_v34, 0.0 }
 0x785   : > { %v1601_v41 = vsel %vm361_vm2, %v2398_v38, 0.0  ;;  %1599 = vadd.xlane.f32.xlu0 %v1598_v40 }
 0x786   : > { %1602 = vadd.xlane.f32.xlu1 %v1601_v41 }
 0x787   : > { %v2400_v42 = vpop.eup %2399 }
 0x788   : > { %v1604_v46 = vsel %vm361_vm2, %v2400_v42, 0.0 }
 0x789   : > { %1605 = vadd.xlane.f32.xlu0 %v1604_v46 }
 0x797   : > { %1811 = vrot.lane.b32.xlu1 %v3030_v2, %s2558_s5 }
 0x79b   : > { %1815 = vrot.lane.b32.xlu1 %v3034_v5, %s2558_s5 }
 0x79f   : > { %1817 = vrot.lane.b32.xlu1 %v3036_v15, %s2558_s5  ;;  %1813 = vrot.lane.b32.xlu0 %v3032_v32, %s2558_s5 }
 0x7a3   : > { %1821 = vrot.lane.b32.xlu1 %v3040_v45, %s2558_s5  ;;  %1819 = vrot.lane.b32.xlu0 %v3038_v16, %s2558_s5 }
 0x7a7   : > { %1825 = vrot.lane.b32.xlu1 %v3044_v18, %s2558_s5  ;;  %1823 = vrot.lane.b32.xlu0 %v3042_v50, %s2558_s5 }
 0x805   : > { %v1585_v2 = vpop.xlane.xlu1 %1584 }
 0x806   : > { %2401 = vrcp.f32 %v1585_v2 }
 0x807   : > { %v1588_v5 = vpop.xlane.xlu0 %1587 }
 0x808   : > { %2403 = vrcp.f32 %v1588_v5 }
 0x80a   : > { %v1591_v15 = vpop.xlane.xlu1 %1590 }
 0x80b   : > { %2405 = vrcp.f32 %v1591_v15 }
 0x80e   : > { %v1597_v29 = vpop.xlane.xlu1 %1596  ;;  %v1594_v32 = vpop.xlane.xlu0 %1593 }
 0x80f   : > { %2407 = vrcp.f32 %v1594_v32 }
 0x810   : > { %v2402_v39 = vpop.eup %2401  ;;  %2409 = vrcp.f32 %v1597_v29 }
 0x811   : > { %v1615_v16 = vmul.f32 %v2402_v39, %v2386_v61 }
 0x812   : > { %v2404_v45 = vpop.eup %2403  ;;  %v1600_v47 = vpop.xlane.xlu0 %1599 }
 0x813   : > { %v1616_v51 = vmul.f32 %v2404_v45, %v2388_v26  ;;  %v1603_v43 = vpop.xlane.xlu1 %1602  ;;  %2411 = vrcp.f32 %v1600_v47 }
 0x814   : > { %2413 = vrcp.f32 %v1603_v43 }
 0x815   : > { %v1623_v18 = vpack.c.bf16 %v1616_v51, %v1615_v16  ;;  %v2406_v52 = vpop.eup %2405 }
 0x816   : > { %v1606_v50 = vpop.xlane.xlu0 %1605  ;;  %v1617_v59 = vmul.f32 %v2406_v52, %v2390_v19 }
 0x817   : > { %2415 = vrcp.f32 %v1606_v50  ;;  %2223 = vmatmul.mubr.msk.bf16.vlgmr.msra.gmra.mrb[48].mxu0 %vm361_vm2, %v1623_v18  ;;  %v1812_v25 = vpop.permute.xlu1 %1811 }
 0x818   : > { %2233 = vmatpush3.bf16.msra.mxu0 %v1329_v62  ;;  %2234 = vmatprep.mubr.msk.bf16.mxu0 %vm2553_vm1, %v2552_v21  ;;  %v1867_v40 = vsel %vm361_vm2, %v2926_v55, %v1812_v25 }
 0x819   : > { %v2408_v53 = vpop.eup %2407 }
 0x81a   : > { %v2410_v56 = vpop.eup %2409  ;;  %v1618_v0 = vmul.f32 %v2408_v53, %v2394_v23 }
 0x81b   : > { %v1619_v8 = vmul.f32 %v2410_v56, %v2392_v24  ;;  %v1816_v28 = vpop.permute.xlu1 %1815  ;;  %v1814_v24 = vpop.permute.xlu0 %1813 }
 0x81c   : > { %v1624_v36 = vpack.c.bf16 %v1618_v0, %v1617_v59  ;;  %v1868_v46 = vsel %vm361_vm2, %v2928_v57, %v1814_v24  ;;  %v1869_v57 = vsel %vm361_vm2, %v2930_v60, %v1816_v28 }
 0x81d   : > { %v2412_v31 = vpop.eup %2411 }
 0x81e   : > { %v1620_v48 = vmul.f32 %v2412_v31, %v2396_v34  ;;  %v2414_v44 = vpop.eup %2413  ;;  %2229 = vmatmul.mubr.msk.bf16.vlgmr.msra.gmra.mrb[48].mxu1 %vm361_vm2, %v1624_v36 }
 0x81f   : > { %2239 = vmatpush3.bf16.msra.mxu1 %v1330_v11  ;;  %2240 = vmatprep.mubr.msk.bf16.mxu1 %vm2553_vm1, %v2552_v21  ;;  %v1621_v62 = vmul.f32 %v2414_v44, %v2398_v38  ;;  %v1818_v23 = vpop.permute.xlu1 %1817  ;;  %v1820_v30 = vpop.permute.xlu0 %1819 }
 0x820   : > { %v1625_v54 = vpack.c.bf16 %v1620_v48, %v1619_v8  ;;  %v1870_v39 = vsel %vm361_vm2, %v2932_v1, %v1818_v23  ;;  %v1871_v51 = vsel %vm361_vm2, %v2934_v4, %v1820_v30 }
 0x821   : > { %v2416_v58 = vpop.eup %2415 }
 0x822   : > { %v1622_v49 = vmul.f32 %v2416_v58, %v2400_v42  ;;  %2235 = vmatmul.mubr.msk.bf16.vlgmr.msra.gmra.mrb[52].mxu0 %vm361_vm2, %v1625_v54 }
 0x823   : > { %v1822_v33 = vpop.permute.xlu1 %1821  ;;  %v1824_v34 = vpop.permute.xlu0 %1823 }
 0x824   : > { %v1626_v10 = vpack.c.bf16 %v1622_v49, %v1621_v62  ;;  %v1872_v1 = vsel %vm361_vm2, %v2936_v6, %v1822_v33  ;;  %v1873_v4 = vsel %vm361_vm2, %v2938_v9, %v1824_v34 }
 0x826   : > { %2241 = vmatmul.mubr.msk.bf16.vlgmr.msra.gmra.mrb[52].mxu1 %vm361_vm2, %v1626_v10 }
 0x827   : > { %v1826_v38 = vpop.permute.xlu1 %1825 }
 0x828   : > { %v1874_v0 = vsel %vm361_vm2, %v2941_v13, %v1826_v38 }
 0x8ea   : > { %v1664_v35 = vpop.f32.mrb[48].mxu0 }
 0x8eb   : > { %1843 = vrot.lane.b32.xlu0 %v1664_v35, %s2555_s9  ;;  %v2224_v12 = vpop.f32.mrb[49].mxu0 }
 0x8ec   : > { %v1667_v37 = vpop.f32.mrb[50].mxu0 }
 0x8ed   : > { %1845 = vrot.lane.b32.xlu1 %v1667_v37, %s2555_s9  ;;  %v2225_v3 = vpop.f32.mrb[51].mxu0 }
 0x8f1   : > { %v1708_v7 = vpop.f32.mrb[48].mxu1 }
 0x8f2   : > { %1847 = vrot.lane.b32.xlu0 %v1708_v7, %s2555_s9  ;;  %v2230_v21 = vpop.f32.mrb[49].mxu1 }
 0x8f3   : > { %v1711_v11 = vpop.f32.mrb[50].mxu1 }
 0x8f4   : > { %1849 = vrot.lane.b32.xlu1 %v1711_v11, %s2555_s9  ;;  %v2231_v61 = vpop.f32.mrb[51].mxu1 }
 0x8f5   : > { %v1752_v63 = vpop.f32.mrb[52].mxu0 }
 0x8f6   : > { %v2236_v17 = vpop.f32.mrb[53].mxu0  ;;  %1851 = vrot.lane.b32.xlu0 %v1752_v63, %s2555_s9 }
 0x8f7   : > { %v1755_v20 = vpop.f32.mrb[54].mxu0 }
 0x8f8   : > { %v2237_v26 = vpop.f32.mrb[55].mxu0  ;;  %1853 = vrot.lane.b32.xlu1 %v1755_v20, %s2555_s9 }
 0x8f9   : > { %v1796_v22 = vpop.f32.mrb[52].mxu1 }
 0x8fa   : > { %1855 = vrot.lane.b32.xlu0 %v1796_v22, %s2555_s9  ;;  %v2242_v14 = vpop.f32.mrb[53].mxu1 }
 0x8fb   : > { %v1799_v27 = vpop.f32.mrb[54].mxu1 }
 0x8fc   : > { %1857 = vrot.lane.b32.xlu1 %v1799_v27, %s2555_s9  ;;  %v2243_v19 = vpop.f32.mrb[55].mxu1 }
 0x95d   : > { %v1844_v41 = vpop.permute.xlu0 %1843 }
 0x95e   : > { %v1875_v42 = vsel %vm256_vm0, %v1867_v40, %v1844_v41 }
 0x95f   : > { %v1884_v2 = vsel %vm1883_vm3, %v1875_v42, 0.0  ;;  %v1846_v5 = vpop.permute.xlu1 %1845 }
 0x960   : > { %1892 = vst [vmem:[%s3108_s28] sm:$0xff] %v1884_v2  ;;  %v1876_v15 = vsel %vm256_vm0, %v1868_v46, %v1846_v5 }
 0x961   : > { %v1885_v55 = vsel %vm1883_vm3, %v1876_v15, 0.0 }
 0x962   : > { %1893 = vst [vmem:[%s3108_s28 + $0x8] sm:$0xff] %v1885_v55 }
 0x964   : > { %v1848_v29 = vpop.permute.xlu0 %1847 }
 0x965   : > { %v1877_v32 = vsel %vm256_vm0, %v1869_v57, %v1848_v29 }
 0x966   : > { %v1886_v45 = vsel %vm1883_vm3, %v1877_v32, 0.0  ;;  %v1850_v47 = vpop.permute.xlu1 %1849 }
 0x967   : > { %1894 = vst [vmem:[%s3108_s28 + $0x10] sm:$0xff] %v1886_v45  ;;  %v1878_v16 = vsel %vm256_vm0, %v1870_v39, %v1850_v47 }
 0x968   : > { %v1887_v60 = vsel %vm1883_vm3, %v1878_v16, 0.0  ;;  %v1852_v43 = vpop.permute.xlu0 %1851 }
 0x969   : > { %1895 = vst [vmem:[%s3108_s28 + $0x18] sm:$0xff] %v1887_v60  ;;  %v1879_v18 = vsel %vm256_vm0, %v1871_v51, %v1852_v43 }
 0x96a   : > { %v1888_v50 = vsel %vm1883_vm3, %v1879_v18, 0.0  ;;  %v1854_v52 = vpop.permute.xlu1 %1853 }
 0x96b   : > { %1896 = vst [vmem:[%s3108_s28 + $0x20] sm:$0xff] %v1888_v50  ;;  %v1880_v53 = vsel %vm256_vm0, %v1872_v1, %v1854_v52 }
 0x96c   : > { %v1889_v56 = vsel %vm1883_vm3, %v1880_v53, 0.0  ;;  %v1856_v59 = vpop.permute.xlu0 %1855 }
 0x96d   : > { %1897 = vst [vmem:[%s3108_s28 + $0x28] sm:$0xff] %v1889_v56  ;;  %v1881_v6 = vsel %vm256_vm0, %v1873_v4, %v1856_v59 }
 0x96e   : > { %v1890_v31 = vsel %vm1883_vm3, %v1881_v6, 0.0  ;;  %v1858_v36 = vpop.permute.xlu1 %1857 }
 0x96f   : > { %1898 = vst [vmem:[%s3108_s28 + $0x30] sm:$0xff] %v1890_v31  ;;  %v1882_v9 = vsel %vm256_vm0, %v1874_v0, %v1858_v36 }
 0x970   : > { %v1891_v8 = vsel %vm1883_vm3, %v1882_v9, 0.0 }
 0x971   : > { %1899 = vst [vmem:[%s3108_s28 + $0x38] sm:$0xff] %v1891_v8 }
 0x972   : > { %2488 = shalt.err (!%p2485_p7)
}
 0x973   : > { %s2489_s8 = scalar_lea.hbm %s3147_s22, 1024  ;;  %s2493_s25 = scalar_lea.hbm %s3198_s3, 2048 }
 0x974   : > { %p2490_p9 = scmp.ne.s32.totalorder %s3147_s22, %s2489_s8  ;;  %p2494_p5 = scmp.lt.u32.totalorder %s3147_s22, %s3198_s3 }
 0x975   : > { %p2495_p11 = scmp.lt.u32.totalorder %s2493_s25, %s2489_s8  ;;  %p2497_p4 = scmp.lt.u32.totalorder %s2489_s8, %s3147_s22 }
 0x976   : > { %p2491_p1 = pnand %p2490_p9, %p2678_p12 }
 0x977   : > { %p2496_p2 = por %p2495_p11, %p2494_p5 }
 0x978   : > { %p2492_p0 = pneg %p2491_p1 }
 0x979   : > { %p2498_p6 = por %p2497_p4, %p2496_p2 }
 0x97b   : > { %p2499_p8 = pnand %p2498_p6, %p2492_p0 }
 0x97d   : > { %2502 = shalt.err (!%p2499_p8)
}
 0x97e   : > { %s2562_s27 = smov 128   ;;  %s2563_s28 = smov 8  }
 0x97f   : > { %2250 = dma.vmem_to_hbm [thread:$0]  (%p2678_p12), %s3137_s23, 1024, %s3147_s22, %s1901_s7, %s2562_s27, %s2562_s27, %s2563_s28  }
 0x980 PF: > { %s1930_s29 = sand.u32 1, %s2533_s12   ;;  %p3213_p10 = scmp.ne.s32.totalorder %s3203_s19, 0 }
 0x981   : > { %p3214_p13 = scmp.ge.s32.totalorder %s2545_s15, 2  ;;  %s1931_s16 = scalar_lea.sflag [#allocation4], %s1930_s29 }
 0x983   : > { %p2261_p3 = pnand %p3214_p13, %p3213_p10 }
 0x985   : > { %2528 = dma.done.wait (!%p2261_p3), %s1931_s16, 1024  }
 0x986   : > { %2530 = vsyncadd (!%p2261_p3), %s1931_s16, 4294966272  ;;  %p17_p7 = scmp.ge.s32.totalorder %s2640_s24, 4   ;;  %s3215_s12 = smov %s2537_s13 }
 0x987   : > { %s3216_s13 = smov %s2541_s14  ;;  %s3217_s14 = smov %s2674_s17 }
 0x988   : > { %s3218_s15 = smov %s2640_s24  ;;  %19 = sbr.rel (!%p17_p7) target bundleno = 6 (0x6), region = 81 }
 0x98f   :  { %1936 = vsyncpa [#allocation3], 1 }
 0x990   :  { %1938 = vsyncpa [#allocation3 + $0x1], 1 }
 0x991   :  { %1939 = vsyncpa [#allocation6], 1 }
 0x992   :  { %1940 = vsyncpa [#allocation4], 1 }
 0x993   :  { %1942 = vsyncpa [#allocation4 + $0x1], 1 }

</bundles_post_ra>
